<compile_context>
chip_gen: v7x
topology: tpu7x:2x2x1
jax: 0.10.0
libtpu: 0.0.40
codegen_flags: <defaults>
</compile_context>

<pallas_src>
import math
from string import ascii_lowercase

import jax
import jax.numpy as jnp
from jax import lax
from jax.experimental import pallas as pl
from jax.experimental.pallas import tpu as pltpu


def einsum_expression(depth):
    if 2 * depth > 26:
        raise ValueError("Depth must be 13 or less due to alphabet limit.")
    main = ascii_lowercase[depth:2 * depth]
    res = ascii_lowercase[:depth]
    mats = [ascii_lowercase[i] + main[i] for i in range(depth)]
    return f"{main}," + ",".join(mats) + f"->{res}"


# ----------------------------------------------------------------------------
# Fused kernel: the whole SignatureLinear forward in ONE pallas_call.
# ----------------------------------------------------------------------------
def _make_signature_linear_kernel(depth, c_in, c_out, has_bias, use_kron):
    """depth / c_in / c_out / has_bias / use_kron are Python statics, so the
    per-level mode-product chains unroll at trace time."""
    n_w2 = depth - 1 if (use_kron and depth >= 2) else 0

    def _apply_level(y, wt, w2t, level):
        # `y` is a 2-D value whose row-major flattening equals the row-major
        # flattening of the level-`level` tensor x[i1, ..., i_level].
        # Repeatedly contract the trailing input mode(s):
        #   pair  : (..., i, i) @ (Wt (x) Wt)  -> (..., a, a)   (MXU: K=in^2, N=out^2)
        #   single: (..., i)    @  Wt          -> (..., a)
        # then move the produced output axes to the FRONT (2-D transpose).
        # After all steps the axes come out in the order (a1, ..., a_level).
        rem = level
        if w2t is not None:
            while rem >= 2:                         # paired modes via Wt (x) Wt
                rows = y.size // (c_in * c_in)
                y = jnp.dot(y.reshape(rows, c_in * c_in), w2t,
                            preferred_element_type=jnp.float32)
                if rows > 1:                        # move (a, a) pair to the front
                    y = y.T
                rem -= 2
        while rem >= 1:                             # remaining single mode(s)
            rows = y.size // c_in
            y = jnp.dot(y.reshape(rows, c_in), wt,
                        preferred_element_type=jnp.float32)
            if rows > 1:                            # move new output axis to front
                y = y.T
            rem -= 1
        # Row-major flatten of (a1, ..., a_level); lane-dense for level >= 2.
        return y.reshape(1, c_out ** level)

    def kernel(*refs):
        x_refs = refs[:depth]
        wt_refs = refs[depth:2 * depth]
        w2_refs = refs[2 * depth:2 * depth + n_w2]
        pos = 2 * depth + n_w2
        b_refs = refs[pos:pos + depth] if has_bias else ()
        o_refs = refs[pos + (depth if has_bias else 0):]

        for lv in range(1, depth + 1):
            y = x_refs[lv - 1][...].astype(jnp.float32)
            wt = wt_refs[lv - 1][...].astype(jnp.float32)
            w2t = None
            if n_w2 > 0 and lv >= 2:
                w2t = w2_refs[lv - 2][...].astype(jnp.float32)
            y = _apply_level(y, wt, w2t, lv)
            if has_bias:                            # fused bias epilogue
                y = y + b_refs[lv - 1][...].astype(jnp.float32)
            o_refs[lv - 1][...] = y.astype(o_refs[lv - 1].dtype)

    return kernel


# ----------------------------------------------------------------------------
# Module wrapper
# ----------------------------------------------------------------------------
class SignatureLinearPallas:
    """JAX/Pallas port of pygsig.signature.SignatureLinear (forward pass)."""

    _VMEM_BUDGET = 20 * 1024 * 1024   # conservative vs. v5e/v6e/v7x scoped VMEM

    def __init__(self, in_channels, out_channels, depth, bias=True, key=None):
        if depth < 1:
            raise ValueError("depth must be >= 1")
        self.in_channels = in_channels
        self.out_channels = out_channels
        self.depth = depth
        self.has_bias = bool(bias)
        if key is None:
            key = jax.random.PRNGKey(0)

        # --- parameters: one independent Linear per signature level -------
        # kaiming_uniform_ (a=0): bound = sqrt(2) * sqrt(3 / fan_in)
        fan_in = in_channels
        w_bound = math.sqrt(2.0) * math.sqrt(3.0 / fan_in)
        b_bound = 1.0 / math.sqrt(fan_in) if fan_in > 0 else 0.0
        self.weights = []
        self.biases = [] if bias else None
        for d in range(1, depth + 1):
            key, k_w, k_b = jax.random.split(key, 3)
            self.weights.append(jax.random.uniform(
                k_w, (out_channels, in_channels), jnp.float32, -w_bound, w_bound))
            if bias:
                self.biases.append(jax.random.uniform(
                    k_b, tuple(out_channels for _ in range(d)),
                    jnp.float32, -b_bound, b_bound))

        # --- precomputed kernel operands -----------------------------------
        # Pre-transposed weights (in, out): canonical MXU contraction, DMA'd
        # to VMEM once per forward call.
        self._wts = [w.T for w in self.weights]
        # Kronecker factors Wt (x) Wt (in^2, out^2): contract two modes per
        # MXU pass (better MXU occupancy, lane-dense results).  Only used
        # while they comfortably fit in VMEM.
        kron_bytes = (in_channels * out_channels) ** 2 * 4
        self.use_kron = depth >= 2 and kron_bytes <= 4 * 1024 * 1024
        self._w2ts = ([jnp.kron(wt, wt) for wt in self._wts[1:]]
                      if self.use_kron else [])
        # Per-level flattened biases (1, out^d), added in the kernel epilogue.
        self._b2d = ([b.reshape(1, -1) for b in self.biases] if bias else [])

        # --- static shapes ---------------------------------------------------
        self._x_shapes, self._o_shapes = [], []
        for d in range(1, depth + 1):
            if self.use_kron and d >= 2:
                xs = (in_channels ** (d - 2), in_channels * in_channels)
            else:
                xs = (in_channels ** (d - 1), in_channels)
            self._x_shapes.append(xs)
            self._o_shapes.append((1, out_channels ** d))
        self.sig_in_len = sum(in_channels ** d for d in range(1, depth + 1))
        self.sig_out_len = sum(out_channels ** d for d in range(1, depth + 1))

        self._pcall = self._build_pallas_call()

    def _build_pallas_call(self):
        c_in, c_out, depth = self.in_channels, self.out_channels, self.depth

        def full_spec(shape):
            return pl.BlockSpec(shape, lambda: (0, 0))

        in_specs = ([full_spec(s) for s in self._x_shapes]
                    + [full_spec((c_in, c_out)) for _ in range(depth)]
                    + [full_spec(tuple(w2.shape)) for w2 in self._w2ts]
                    + [full_spec(tuple(b.shape)) for b in self._b2d])
        out_specs = tuple(full_spec(s) for s in self._o_shapes)
        out_shape = tuple(jax.ShapeDtypeStruct(s, jnp.float32)
                          for s in self._o_shapes)

        # Rough f32 VMEM footprint (inputs + outputs + chain intermediates).
        elems = (sum(a * b for a, b in self._x_shapes)
                 + depth * c_in * c_out
                 + sum(int(w2.size) for w2 in self._w2ts)
                 + sum(int(b.size) for b in self._b2d)
                 + sum(a * b for a, b in self._o_shapes)
                 + 4 * max(a * b for a, b in self._x_shapes))
        vmem_bytes = 4 * elems
        # TODO(synk): for configurations whose per-level tensors exceed VMEM,
        # tile the leading (row) dimension of the first mode product with a
        # grid (parallel semantics) instead of this fully-fused single-block
        # kernel.
        assert vmem_bytes <= self._VMEM_BUDGET, (
            f"fused SignatureLinear kernel needs ~{vmem_bytes} bytes of VMEM; "
            "this configuration requires tiling the leading dimension")

        kernel = _make_signature_linear_kernel(
            depth, c_in, c_out, self.has_bias, self.use_kron)

        return pl.pallas_call(
            kernel,
            out_shape=out_shape,
            in_specs=in_specs,
            out_specs=out_specs,
            compiler_params=pltpu.CompilerParams(
                vmem_limit_bytes=32 * 1024 * 1024),
        )

    def __call__(self, x):
        c_in, depth = self.in_channels, self.depth
        assert x.shape == (self.sig_in_len,), x.shape
        # extract_signature_term for every level (thin XLA glue: tiny slices;
        # all heavy mode-product work happens inside the single pallas_call).
        xs, off = [], 0
        for d in range(1, depth + 1):
            n = c_in ** d
            xs.append(x[off:off + n].reshape(self._x_shapes[d - 1]))
            off += n
        args = xs + self._wts + self._w2ts + self._b2d
        outs = self._pcall(*args)
        if not isinstance(outs, (tuple, list)):
            outs = (outs,)
        return jnp.concatenate([o.reshape(-1) for o in outs], axis=0)


# ----------------------------------------------------------------------------
# Demo / self-check
# ----------------------------------------------------------------------------
if __name__ == "__main__":
    key = jax.random.PRNGKey(0)
    k_x, k_p = jax.random.split(key)

    in_channels, out_channels, depth = 32, 16, 3
    mod = SignatureLinearPallas(in_channels, out_channels, depth,
                                bias=True, key=k_p)

    x = jax.random.normal(k_x, (mod.sig_in_len,), jnp.float32)

    out = jax.block_until_ready(mod(x))
    assert out.shape == (mod.sig_out_len,)

    # Pure-JAX reference: per-level einsum (same expression the PyTorch
    # module builds) + bias, flattened and concatenated.
    ref_parts, off = [], 0
    for d in range(1, depth + 1):
        n = in_channels ** d
        z = x[off:off + n].reshape(tuple(in_channels for _ in range(d)))
        off += n
        r = jnp.einsum(einsum_expression(d), z,
                       *[mod.weights[d - 1] for _ in range(d)],
                       precision=lax.Precision.HIGHEST)
        r = r + mod.biases[d - 1]
        ref_parts.append(r.reshape(-1))
    ref = jax.block_until_ready(jnp.concatenate(ref_parts))

    max_err = jnp.max(jnp.abs(out - ref))
    assert jnp.allclose(out, ref, rtol=2e-4, atol=2e-4), \
        f"max abs err {max_err}"

    print("KERNEL_OK")
</pallas_src>

<mosaic_0001>
module attributes {stable_mosaic.version = 11 : i64} {
  func.func @kernel(%arg0: memref<1x32xf32, #tpu.memory_space<vmem>>, %arg1: memref<1x1024xf32, #tpu.memory_space<vmem>>, %arg2: memref<32x1024xf32, #tpu.memory_space<vmem>>, %arg3: memref<32x16xf32, #tpu.memory_space<vmem>>, %arg4: memref<32x16xf32, #tpu.memory_space<vmem>>, %arg5: memref<32x16xf32, #tpu.memory_space<vmem>>, %arg6: memref<1024x256xf32, #tpu.memory_space<vmem>>, %arg7: memref<1024x256xf32, #tpu.memory_space<vmem>>, %arg8: memref<1x16xf32, #tpu.memory_space<vmem>>, %arg9: memref<1x256xf32, #tpu.memory_space<vmem>>, %arg10: memref<1x4096xf32, #tpu.memory_space<vmem>>, %arg11: memref<1x16xf32, #tpu.memory_space<vmem>>, %arg12: memref<1x256xf32, #tpu.memory_space<vmem>>, %arg13: memref<1x4096xf32, #tpu.memory_space<vmem>>) attributes {dimension_semantics = [], scalar_prefetch = 0 : i64, scratch_operands = 0 : i64, tpu.core_type = #tpu.core_type<tc>} {
    %c0 = arith.constant 0 : index
    %c0_0 = arith.constant 0 : index
    %0 = vector.load %arg0[%c0, %c0_0] : memref<1x32xf32, #tpu.memory_space<vmem>>, vector<1x32xf32>
    %c0_1 = arith.constant 0 : index
    %c0_2 = arith.constant 0 : index
    %1 = vector.load %arg3[%c0_1, %c0_2] : memref<32x16xf32, #tpu.memory_space<vmem>>, vector<32x16xf32>
    %cst = arith.constant dense<0.000000e+00> : vector<1x16xf32>
    %2 = tpu.matmul %0, %1, %cst {dimension_numbers = #tpu.dot_dimension_numbers<[1], [0], [0], [1], [0, 0, 1, 1], [], []>} : vector<1x32xf32>, vector<32x16xf32>, vector<1x16xf32> -> vector<1x16xf32>
    %c0_3 = arith.constant 0 : index
    %c0_4 = arith.constant 0 : index
    %3 = vector.load %arg8[%c0_3, %c0_4] : memref<1x16xf32, #tpu.memory_space<vmem>>, vector<1x16xf32>
    %4 = arith.addf %2, %3 : vector<1x16xf32>
    %c0_5 = arith.constant 0 : index
    %c0_6 = arith.constant 0 : index
    %5 = vector.load %arg11[%c0_5, %c0_6] : memref<1x16xf32, #tpu.memory_space<vmem>>, vector<1x16xf32>
    tpu.vector_store %arg11[%c0_5, %c0_6], %4 {strides = array<i32>} : memref<1x16xf32, #tpu.memory_space<vmem>>, vector<1x16xf32>,
    %c0_7 = arith.constant 0 : index
    %c0_8 = arith.constant 0 : index
    %6 = vector.load %arg1[%c0_7, %c0_8] : memref<1x1024xf32, #tpu.memory_space<vmem>>, vector<1x1024xf32>
    %c0_9 = arith.constant 0 : index
    %c0_10 = arith.constant 0 : index
    %7 = vector.load %arg6[%c0_9, %c0_10] : memref<1024x256xf32, #tpu.memory_space<vmem>>, vector<1024x256xf32>
    %cst_11 = arith.constant dense<0.000000e+00> : vector<1x256xf32>
    %8 = tpu.matmul %6, %7, %cst_11 {dimension_numbers = #tpu.dot_dimension_numbers<[1], [0], [0], [1], [0, 0, 1, 1], [], []>} : vector<1x1024xf32>, vector<1024x256xf32>, vector<1x256xf32> -> vector<1x256xf32>
    %c0_12 = arith.constant 0 : index
    %c0_13 = arith.constant 0 : index
    %9 = vector.load %arg9[%c0_12, %c0_13] : memref<1x256xf32, #tpu.memory_space<vmem>>, vector<1x256xf32>
    %10 = arith.addf %8, %9 : vector<1x256xf32>
    %c0_14 = arith.constant 0 : index
    %c0_15 = arith.constant 0 : index
    %11 = vector.load %arg12[%c0_14, %c0_15] : memref<1x256xf32, #tpu.memory_space<vmem>>, vector<1x256xf32>
    tpu.vector_store %arg12[%c0_14, %c0_15], %10 {strides = array<i32>} : memref<1x256xf32, #tpu.memory_space<vmem>>, vector<1x256xf32>,
    %c0_16 = arith.constant 0 : index
    %c0_17 = arith.constant 0 : index
    %12 = vector.load %arg2[%c0_16, %c0_17] : memref<32x1024xf32, #tpu.memory_space<vmem>>, vector<32x1024xf32>
    %c0_18 = arith.constant 0 : index
    %c0_19 = arith.constant 0 : index
    %13 = vector.load %arg5[%c0_18, %c0_19] : memref<32x16xf32, #tpu.memory_space<vmem>>, vector<32x16xf32>
    %c0_20 = arith.constant 0 : index
    %c0_21 = arith.constant 0 : index
    %14 = vector.load %arg7[%c0_20, %c0_21] : memref<1024x256xf32, #tpu.memory_space<vmem>>, vector<1024x256xf32>
    %cst_22 = arith.constant dense<0.000000e+00> : vector<32x256xf32>
    %15 = tpu.matmul %12, %14, %cst_22 {dimension_numbers = #tpu.dot_dimension_numbers<[1], [0], [0], [1], [0, 0, 1, 1], [], []>} : vector<32x1024xf32>, vector<1024x256xf32>, vector<32x256xf32> -> vector<32x256xf32>
    %16 = tpu.transpose %15, [1, 0] : vector<32x256xf32> -> vector<256x32xf32>
    %cst_23 = arith.constant dense<0.000000e+00> : vector<256x16xf32>
    %17 = tpu.matmul %16, %13, %cst_23 {dimension_numbers = #tpu.dot_dimension_numbers<[1], [0], [0], [1], [0, 0, 1, 1], [], []>} : vector<256x32xf32>, vector<32x16xf32>, vector<256x16xf32> -> vector<256x16xf32>
    %18 = tpu.transpose %17, [1, 0] : vector<256x16xf32> -> vector<16x256xf32>
    %19 = vector.shape_cast %18 : vector<16x256xf32> to vector<1x4096xf32>
    %c0_24 = arith.constant 0 : index
    %c0_25 = arith.constant 0 : index
    %20 = vector.load %arg10[%c0_24, %c0_25] : memref<1x4096xf32, #tpu.memory_space<vmem>>, vector<1x4096xf32>
    %21 = arith.addf %19, %20 : vector<1x4096xf32>
    %c0_26 = arith.constant 0 : index
    %c0_27 = arith.constant 0 : index
    %22 = vector.load %arg13[%c0_26, %c0_27] : memref<1x4096xf32, #tpu.memory_space<vmem>>, vector<1x4096xf32>
    tpu.vector_store %arg13[%c0_26, %c0_27], %21 {strides = array<i32>} : memref<1x4096xf32, #tpu.memory_space<vmem>>, vector<1x4096xf32>,
    return
  }
}

</mosaic_0001>

<bundles_post_ra>
// kernel: tpu_custom_call.1
= control target key start
LH: loop header
LB: loop body
LE: loop exit
PB: predicated region body
PF: predicated region fallthrough
CT: control target
= control target key end

     0   :  { %19 = vsyncpa [#allocation3], 0  ;;  %s3116_s0 = inlined_call_operand.vmem [shape: f32[1,32], index: 0, kind: input, shape index: {}]   ;;  %s3117_s1 = inlined_call_operand.vmem [shape: f32[1,1024], index: 1, kind: input, shape index: {}]   ;;  %s3118_s2 = inlined_call_operand.hbm [shape: f32[32,1024], index: 2, kind: input, shape index: {}]   ;;  %s3119_s3 = inlined_call_operand.vmem [shape: f32[32,16], index: 3, kind: input, shape index: {}]   ;;  %s3120_s4 = inlined_call_operand.vmem [shape: f32[32,16], index: 4, kind: input, shape index: {}]   ;;  %s3121_s5 = inlined_call_operand.vmem [shape: f32[32,16], index: 5, kind: input, shape index: {}]   ;;  %s3122_s6 = inlined_call_operand.hbm [shape: f32[1024,256], index: 6, kind: input, shape index: {}]   ;;  %s3123_s7 = inlined_call_operand.hbm [shape: f32[1024,256], index: 7, kind: input, shape index: {}]   ;;  %s3124_s8 = inlined_call_operand.vmem [shape: f32[1,16], index: 8, kind: input, shape index: {}]   ;;  %s3125_s9 = inlined_call_operand.vmem [shape: f32[1,256], index: 9, kind: input, shape index: {}]   ;;  %s3126_s10 = inlined_call_operand.vmem [shape: f32[1,4096], index: 10, kind: input, shape index: {}]   ;;  %s3127_s11 = inlined_call_operand.hbm [shape: f32[1,16], index: 11, kind: output, shape index: {0}]   ;;  %s3128_s12 = inlined_call_operand.hbm [shape: f32[1,256], index: 12, kind: output, shape index: {1}]   ;;  %s3129_s13 = inlined_call_operand.hbm [shape: f32[1,4096], index: 13, kind: output, shape index: {2}]  }
   0x1   :  { %20 = vsyncpa [#allocation6], 0 }
   0x2   :  { %21 = vsyncpa [#allocation4], 0 }
   0x3   :  { %22 = vsyncpa [#allocation10], 0  ;;  %s2834_s24 = smov [#allocation5]   ;;  %s2694_s28 = scalar_lea.hbm %s3122_s6, 32768 }
   0x4   :  { %s50_s25 = sshll.u32 %s2834_s24, 4  ;;  %p2695_p0 = scmp.ne.s32.totalorder %s3122_s6, %s2694_s28  ;;  %s51_s25 = int_to_ptr.vmem [resolvable:$true] %s50_s25 }
   0x5   :  { %p2698_p1 = scmp.lt.u32.totalorder %s2694_s28, %s3122_s6 }
   0x7   :  { %p2700_p2 = pnand %p2698_p1, %p2695_p0 }
   0x9   :  { %2703 = shalt.err (!%p2700_p2)
}
   0xa   :  { %s2704_s16 = scalar_lea.vmem %s51_s25, 32768  ;;  %p2709_p4 = scmp.lt.s32.totalorder %s51_s25, %s51_s25 }
   0xb   :  { %p2705_p3 = scmp.ne.s32.totalorder %s51_s25, %s2704_s16  ;;  %p2710_p5 = scmp.lt.s32.totalorder %s2704_s16, %s2704_s16 }
   0xd   :  { %p2711_p6 = por %p2710_p5, %p2709_p4 }
   0xf   :  { %p2712_p7 = pnand %p2711_p6, %p2705_p3 }
  0x11   :  { %2715 = shalt.err (!%p2712_p7)
}
  0x12   :  { %s2835_s17 = smov 256   ;;  %s2836_s18 = smov 16  }
  0x13   :  { %56 = dma.hbm_to_vmem [thread:$0]  %s3122_s6, 32768, %s51_s25, [#allocation6], %s2835_s17, %s2835_s17, %s2836_s18  }
  0x14   :  { %s2837_s20 = smov [#allocation2]   ;;  %s2716_s24 = scalar_lea.hbm %s3118_s2, 4096 }
  0x15   :  { %s32_s21 = sshll.u32 %s2837_s20, 4  ;;  %p2717_p8 = scmp.ne.s32.totalorder %s3118_s2, %s2716_s24  ;;  %s33_s21 = int_to_ptr.vmem [resolvable:$true] %s32_s21 }
  0x16   :  { %p2720_p9 = scmp.lt.u32.totalorder %s2716_s24, %s3118_s2 }
  0x18   :  { %p2722_p10 = pnand %p2720_p9, %p2717_p8 }
  0x1a   :  { %2725 = shalt.err (!%p2722_p10)
}
  0x1b   :  { %s2726_s30 = scalar_lea.vmem %s33_s21, 4096  ;;  %p2731_p12 = scmp.lt.s32.totalorder %s33_s21, %s33_s21 }
  0x1c   :  { %p2727_p11 = scmp.ne.s32.totalorder %s33_s21, %s2726_s30  ;;  %p2732_p13 = scmp.lt.s32.totalorder %s2726_s30, %s2726_s30 }
  0x1e   :  { %p2733_p0 = por %p2732_p13, %p2731_p12 }
  0x20   :  { %p2734_p1 = pnand %p2733_p0, %p2727_p11 }
  0x22   :  { %2737 = shalt.err (!%p2734_p1)
}
  0x23   :  { %s2838_s6 = smov 1024   ;;  %s2839_s25 = smov 64  }
  0x24   :  { %38 = dma.hbm_to_vmem [thread:$0]  %s3118_s2, 4096, %s33_s21, [#allocation3], %s2838_s6, %s2838_s6, %s2839_s25  }
  0x25   :  { %s2840_s16 = smov [#allocation7]   ;;  %s2738_s22 = scalar_lea.hbm %s3123_s7, 32768 }
  0x26   :  { %s62_s19 = sshll.u32 %s2840_s16, 4  ;;  %p2739_p2 = scmp.ne.s32.totalorder %s3123_s7, %s2738_s22  ;;  %s63_s19 = int_to_ptr.vmem [resolvable:$true] %s62_s19 }
  0x27   :  { %p2742_p3 = scmp.lt.u32.totalorder %s2738_s22, %s3123_s7 }
  0x29   :  { %p2744_p4 = pnand %p2742_p3, %p2739_p2 }
  0x2b   :  { %2747 = shalt.err (!%p2744_p4)
}
  0x2c   :  { %s2748_s28 = scalar_lea.vmem %s63_s19, 32768  ;;  %p2753_p6 = scmp.lt.s32.totalorder %s63_s19, %s63_s19 }
  0x2d   :  { %p2749_p5 = scmp.ne.s32.totalorder %s63_s19, %s2748_s28  ;;  %p2754_p7 = scmp.lt.s32.totalorder %s2748_s28, %s2748_s28 }
  0x2f   :  { %p2755_p8 = por %p2754_p7, %p2753_p6 }
  0x31   :  { %p2756_p9 = pnand %p2755_p8, %p2749_p5 }
  0x33   :  { %2759 = shalt.err (!%p2756_p9)
}
  0x34   :  { %68 = dma.hbm_to_vmem [thread:$0]  %s3123_s7, 32768, %s63_s19, [#allocation6], %s2835_s17, %s2835_s17, %s2836_s18  }
  0x35   :  { %2826 = dma.done.wait [#allocation3], 4096  }
  0x36   :  { %2827 = vsyncadd [#allocation3], 4294963200 }
  0x37   :  { %2828 = dma.done.wait [#allocation6], 65536  }
  0x38   :  { %2829 = vsyncadd [#allocation6], 4294901760  ;;  %v2841_v0 = vmov 0.0|0.0   ;;  %vm2842_vm0 = vmmov 0   ;;  %v2843_v1 = vmov 0.0   ;;  %v85_v2 = vld [vmem:[%s3119_s3] sm:$0xff] }
  0x39   :  { %2116 = vmatprep.subr.bf16.mxu0 %v2841_v0  ;;  %2057 = vmatprep.mubr.msk.f32.mxu0 %vm2842_vm0, %v2843_v1  ;;  %v86_v3 = vld [vmem:[%s3119_s3 + $0x8] sm:$0xff]  ;;  %v87_v4 = vld [vmem:[%s3119_s3 + $0x10] sm:$0xff]  ;;  %v88_v6 = vld [vmem:[%s3119_s3 + $0x18] sm:$0xff]  ;;  %vm90_vm1 = vcmask 261120   ;;  %vm164_vm2 = vcmask 122880   ;;  %s2846_s30 = smov [#allocation8]  }
  0x3a   :  { %v2117_v5 = vpack.c.bf16 %v86_v3, %v85_v2  ;;  %v820_v7 = vld [vmem:[#allocation7 + $0x8] sm:$0xff]  ;;  %v822_v8 = vld [vmem:[#allocation7 + $0x18] sm:$0xff]  ;;  %v2120_v9 = vpack.c.bf16 %v88_v6, %v87_v4  ;;  %v819_v11 = vld [vmem:[#allocation7] sm:$0xff]  ;;  %s1938_s6 = sshll.u32 %s2846_s30, 4  ;;  %s1939_s6 = int_to_ptr.vmem [resolvable:$true] %s1938_s6 }
  0x3b   :  { %v2378_v10 = vpack.c.bf16 %v822_v8, %v820_v7  ;;  %v821_v12 = vld [vmem:[#allocation7 + $0x10] sm:$0xff]  ;;  %v824_v13 = vld [vmem:[#allocation7 + $0x28] sm:$0xff]  ;;  %v826_v14 = vld [vmem:[#allocation7 + $0x38] sm:$0xff] }
  0x3c   :  { %2118 = vmatpush3.bf16.msra.mxu0 %v2117_v5  ;;  %v84_v15 = vld [vmem:[%s3116_s0] sm:$0x1]  ;;  %v2380_v16 = vpack.c.bf16 %v821_v12, %v819_v11  ;;  %v2382_v17 = vpack.c.bf16 %v826_v14, %v824_v13  ;;  %v825_v19 = vld [vmem:[#allocation7 + $0x30] sm:$0xff]  ;;  %v828_v20 = vld [vmem:[#allocation7 + $0x48] sm:$0xff] }
  0x3d   :  { %2119 = vmatprep.subr.bf16.mxu0 %v2841_v0  ;;  %v823_v18 = vld [vmem:[#allocation7 + $0x20] sm:$0xff]  ;;  %v830_v21 = vld [vmem:[#allocation7 + $0x58] sm:$0xff]  ;;  %v829_v25 = vld [vmem:[#allocation7 + $0x50] sm:$0xff] }
  0x3e   :  { %v2384_v22 = vpack.c.bf16 %v825_v19, %v823_v18  ;;  %v2386_v23 = vpack.c.bf16 %v830_v21, %v828_v20  ;;  %v827_v24 = vld [vmem:[#allocation7 + $0x40] sm:$0xff]  ;;  %v832_v26 = vld [vmem:[#allocation7 + $0x68] sm:$0xff]  ;;  %v834_v27 = vld [vmem:[#allocation7 + $0x78] sm:$0xff] }
  0x3f   :  { %v2388_v28 = vpack.c.bf16 %v829_v25, %v827_v24  ;;  %v2390_v29 = vpack.c.bf16 %v834_v27, %v832_v26  ;;  %v831_v30 = vld [vmem:[#allocation7 + $0x60] sm:$0xff]  ;;  %v833_v31 = vld [vmem:[#allocation7 + $0x70] sm:$0xff]  ;;  %v836_v32 = vld [vmem:[#allocation7 + $0x88] sm:$0xff] }
  0x40   :  { %2121 = vmatpush3.bf16.msra.mxu0 %v2120_v9  ;;  %v838_v33 = vld [vmem:[#allocation7 + $0x98] sm:$0xff]  ;;  %v2392_v34 = vpack.c.bf16 %v833_v31, %v831_v30  ;;  %v835_v36 = vld [vmem:[#allocation7 + $0x80] sm:$0xff]  ;;  %v837_v37 = vld [vmem:[#allocation7 + $0x90] sm:$0xff] }
  0x41   :  { %2379 = vmatprep.subr.bf16.mxu0 %v2378_v10  ;;  %v2394_v35 = vpack.c.bf16 %v838_v33, %v836_v32  ;;  %v840_v38 = vld [vmem:[#allocation7 + $0xa8] sm:$0xff]  ;;  %v842_v39 = vld [vmem:[#allocation7 + $0xb8] sm:$0xff]  ;;  %v2396_v40 = vpack.c.bf16 %v837_v37, %v835_v36  ;;  %v839_v43 = vld [vmem:[#allocation7 + $0xa0] sm:$0xff] }
  0x42   :  { %v784_v41 = vld [vmem:[#allocation2 + $0x8] sm:$0xff]  ;;  %v2398_v42 = vpack.c.bf16 %v842_v39, %v840_v38  ;;  %v841_v44 = vld [vmem:[#allocation7 + $0xb0] sm:$0xff]  ;;  %v846_v46 = vld [vmem:[#allocation7 + $0xd8] sm:$0xff] }
  0x43   :  { %2058 = vmatmul.mubr.msk.f32.vlgmr.msra.gmra.mrb[0].mxu0 %vm90_vm1, %v84_v15  ;;  %v844_v45 = vld [vmem:[#allocation7 + $0xc8] sm:$0xff]  ;;  %v2400_v47 = vpack.c.bf16 %v841_v44, %v839_v43  ;;  %v843_v49 = vld [vmem:[#allocation7 + $0xc0] sm:$0xff]  ;;  %v845_v50 = vld [vmem:[#allocation7 + $0xd0] sm:$0xff] }
  0x44   :  { %2381 = vmatpush1.bf16.msra.mxu0 %v2380_v16  ;;  %1139 = vmatprep.mubr.f32.mxu0 %v784_v41  ;;  %v2402_v48 = vpack.c.bf16 %v846_v46, %v844_v45  ;;  %v848_v51 = vld [vmem:[#allocation7 + $0xe8] sm:$0xff]  ;;  %v850_v52 = vld [vmem:[#allocation7 + $0xf8] sm:$0xff]  ;;  %v2404_v53 = vpack.c.bf16 %v845_v50, %v843_v49  ;;  %v847_v55 = vld [vmem:[#allocation7 + $0xe0] sm:$0xff] }
  0x45   :  { %2383 = vmatprep.subr.bf16.mxu0 %v2382_v17  ;;  %v2406_v54 = vpack.c.bf16 %v850_v52, %v848_v51  ;;  %v849_v56 = vld [vmem:[#allocation7 + $0xf0] sm:$0xff]  ;;  %v852_v57 = vld [vmem:[#allocation7 + $0x108] sm:$0xff]  ;;  %v854_v58 = vld [vmem:[#allocation7 + $0x118] sm:$0xff] }
  0x46   :  { %v2408_v59 = vpack.c.bf16 %v849_v56, %v847_v55  ;;  %v2410_v60 = vpack.c.bf16 %v854_v58, %v852_v57  ;;  %v851_v61 = vld [vmem:[#allocation7 + $0x100] sm:$0xff]  ;;  %v853_v62 = vld [vmem:[#allocation7 + $0x110] sm:$0xff]  ;;  %v856_v63 = vld [vmem:[#allocation7 + $0x128] sm:$0xff] }
  0x47   :  { %v858_v0 = vld [vmem:[#allocation7 + $0x138] sm:$0xff]  ;;  %v2412_v1 = vpack.c.bf16 %v853_v62, %v851_v61  ;;  %v855_v3 = vld [vmem:[#allocation7 + $0x120] sm:$0xff]  ;;  %v857_v4 = vld [vmem:[#allocation7 + $0x130] sm:$0xff] }
  0x48   :  { %2385 = vmatpush1.bf16.msra.mxu0 %v2384_v22  ;;  %v2414_v2 = vpack.c.bf16 %v858_v0, %v856_v63  ;;  %v860_v5 = vld [vmem:[#allocation7 + $0x148] sm:$0xff]  ;;  %v862_v6 = vld [vmem:[#allocation7 + $0x158] sm:$0xff]  ;;  %v2416_v7 = vpack.c.bf16 %v857_v4, %v855_v3  ;;  %v859_v9 = vld [vmem:[#allocation7 + $0x140] sm:$0xff] }
  0x49   :  { %2387 = vmatprep.subr.bf16.mxu0 %v2386_v23  ;;  %v2418_v8 = vpack.c.bf16 %v862_v6, %v860_v5  ;;  %v861_v10 = vld [vmem:[#allocation7 + $0x150] sm:$0xff]  ;;  %v864_v11 = vld [vmem:[#allocation7 + $0x168] sm:$0xff]  ;;  %v866_v12 = vld [vmem:[#allocation7 + $0x178] sm:$0xff] }
  0x4a   :  { %v2420_v13 = vpack.c.bf16 %v861_v10, %v859_v9  ;;  %v2422_v14 = vpack.c.bf16 %v866_v12, %v864_v11  ;;  %v863_v15 = vld [vmem:[#allocation7 + $0x160] sm:$0xff]  ;;  %v865_v16 = vld [vmem:[#allocation7 + $0x170] sm:$0xff]  ;;  %v868_v17 = vld [vmem:[#allocation7 + $0x188] sm:$0xff] }
  0x4b   :  { %v870_v18 = vld [vmem:[#allocation7 + $0x198] sm:$0xff]  ;;  %v2424_v19 = vpack.c.bf16 %v865_v16, %v863_v15  ;;  %v867_v21 = vld [vmem:[#allocation7 + $0x180] sm:$0xff]  ;;  %v869_v22 = vld [vmem:[#allocation7 + $0x190] sm:$0xff] }
  0x4c   :  { %2389 = vmatpush1.bf16.msra.mxu0 %v2388_v28  ;;  %v2426_v20 = vpack.c.bf16 %v870_v18, %v868_v17  ;;  %v872_v23 = vld [vmem:[#allocation7 + $0x1a8] sm:$0xff]  ;;  %v874_v24 = vld [vmem:[#allocation7 + $0x1b8] sm:$0xff]  ;;  %v2428_v25 = vpack.c.bf16 %v869_v22, %v867_v21  ;;  %v871_v27 = vld [vmem:[#allocation7 + $0x1a0] sm:$0xff] }
  0x4d   :  { %2391 = vmatprep.subr.bf16.mxu0 %v2390_v29  ;;  %v2430_v26 = vpack.c.bf16 %v874_v24, %v872_v23  ;;  %v873_v28 = vld [vmem:[#allocation7 + $0x1b0] sm:$0xff]  ;;  %v876_v29 = vld [vmem:[#allocation7 + $0x1c8] sm:$0xff]  ;;  %v878_v30 = vld [vmem:[#allocation7 + $0x1d8] sm:$0xff] }
  0x4e   :  { %v2432_v31 = vpack.c.bf16 %v873_v28, %v871_v27  ;;  %v2434_v32 = vpack.c.bf16 %v878_v30, %v876_v29  ;;  %v875_v33 = vld [vmem:[#allocation7 + $0x1c0] sm:$0xff]  ;;  %v882_v36 = vld [vmem:[#allocation7 + $0x1f8] sm:$0xff]  ;;  %v884_v41 = vld [vmem:[#allocation7 + $0x208] sm:$0xff] }
  0x4f   :  { %v879_v39 = vld [vmem:[#allocation7 + $0x1e0] sm:$0xff]  ;;  %v885_v46 = vld [vmem:[#allocation7 + $0x210] sm:$0xff]  ;;  %v892_v55 = vld [vmem:[#allocation7 + $0x248] sm:$0xff] }
  0x50   :  { %2393 = vmatpush1.bf16.msra.mxu0 %v2392_v34  ;;  %v877_v34 = vld [vmem:[#allocation7 + $0x1d0] sm:$0xff]  ;;  %v883_v45 = vld [vmem:[#allocation7 + $0x200] sm:$0xff]  ;;  %v894_v56 = vld [vmem:[#allocation7 + $0x258] sm:$0xff] }
  0x51   :  { %2395 = vmatprep.subr.bf16.mxu0 %v2394_v35  ;;  %v880_v35 = vld [vmem:[#allocation7 + $0x1e8] sm:$0xff]  ;;  %v2436_v37 = vpack.c.bf16 %v877_v34, %v875_v33  ;;  %v783_v49 = vld [vmem:[#allocation2] sm:$0xff]  ;;  %v2444_v50 = vpack.c.bf16 %v885_v46, %v883_v45  ;;  %v2450_v62 = vpack.c.bf16 %v894_v56, %v892_v55  ;;  %v169_v5 = vld [vmem:[#allocation5 + $0x10] sm:$0xff] }
  0x52   :  { %v2438_v38 = vpack.c.bf16 %v882_v36, %v880_v35  ;;  %v887_v52 = vld [vmem:[#allocation7 + $0x220] sm:$0xff]  ;;  %v800_v63 = vld [vmem:[#allocation2 + $0x88] sm:$0xff]  ;;  %v897_v9 = vld [vmem:[#allocation7 + $0x270] sm:$0xff] }
  0x53   :  { %v891_v57 = vld [vmem:[#allocation7 + $0x240] sm:$0xff]  ;;  %v168_v0 = vld [vmem:[#allocation5 + $0x8] sm:$0xff]  ;;  %v174_v15 = vld [vmem:[#allocation5 + $0x38] sm:$0xff] }
  0x54   :  { %2397 = vmatpush1.bf16.msra.mxu0 %v2396_v40  ;;  %v881_v40 = vld [vmem:[#allocation7 + $0x1f0] sm:$0xff]  ;;  %v791_v61 = vld [vmem:[#allocation2 + $0x40] sm:$0xff]  ;;  %v900_v10 = vld [vmem:[#allocation7 + $0x288] sm:$0xff] }
  0x55   :  { %2399 = vmatprep.subr.bf16.mxu0 %v2398_v42  ;;  %v886_v42 = vld [vmem:[#allocation7 + $0x218] sm:$0xff]  ;;  %v2440_v43 = vpack.c.bf16 %v881_v40, %v879_v39  ;;  %v167_v4 = vld [vmem:[#allocation5] sm:$0xff]  ;;  %v901_v23 = vld [vmem:[#allocation7 + $0x290] sm:$0xff] }
  0x56   :  { %v2442_v44 = vpack.c.bf16 %v886_v42, %v884_v41  ;;  %v895_v6 = vld [vmem:[#allocation7 + $0x260] sm:$0xff]  ;;  %v902_v16 = vld [vmem:[#allocation7 + $0x298] sm:$0xff]  ;;  %v904_v24 = vld [vmem:[#allocation7 + $0x2a8] sm:$0xff] }
  0x57   :  { %v799_v11 = vld [vmem:[#allocation2 + $0x80] sm:$0xff]  ;;  %v2456_v22 = vpack.c.bf16 %v897_v9, %v895_v6  ;;  %v786_v27 = vld [vmem:[#allocation2 + $0x18] sm:$0xff]  ;;  %v176_v28 = vld [vmem:[#allocation5 + $0x48] sm:$0xff] }
  0x58   :  { %2401 = vmatpush1.bf16.msra.mxu0 %v2400_v47  ;;  %v888_v47 = vld [vmem:[#allocation7 + $0x228] sm:$0xff]  ;;  %v171_v18 = vld [vmem:[#allocation5 + $0x20] sm:$0xff]  ;;  %v178_v29 = vld [vmem:[#allocation5 + $0x58] sm:$0xff] }
  0x59   :  { %2403 = vmatprep.subr.bf16.mxu0 %v2402_v48  ;;  %v890_v48 = vld [vmem:[#allocation7 + $0x238] sm:$0xff]  ;;  %v177_v33 = vld [vmem:[#allocation5 + $0x50] sm:$0xff]  ;;  %v903_v36 = vld [vmem:[#allocation7 + $0x2a0] sm:$0xff] }
  0x5a   :  { %v2446_v51 = vpack.c.bf16 %v890_v48, %v888_v47  ;;  %v906_v30 = vld [vmem:[#allocation7 + $0x2b8] sm:$0xff]  ;;  %v908_v39 = vld [vmem:[#allocation7 + $0x2c8] sm:$0xff]  ;;  %v181_v45 = vld [vmem:[#allocation5 + $0x70] sm:$0xff] }
  0x5b   :  { %v180_v40 = vld [vmem:[#allocation5 + $0x68] sm:$0xff]  ;;  %v182_v41 = vld [vmem:[#allocation5 + $0x78] sm:$0xff]  ;;  %v907_v48 = vld [vmem:[#allocation7 + $0x2c0] sm:$0xff] }
  0x5c   :  { %2405 = vmatpush1.bf16.msra.mxu0 %v2404_v53  ;;  %v889_v53 = vld [vmem:[#allocation7 + $0x230] sm:$0xff]  ;;  %v910_v42 = vld [vmem:[#allocation7 + $0x2d8] sm:$0xff]  ;;  %v183_v56 = vld [vmem:[#allocation5 + $0x80] sm:$0xff] }
  0x5d   :  { %2407 = vmatprep.subr.bf16.mxu0 %v2406_v54  ;;  %v792_v54 = vld [vmem:[#allocation2 + $0x48] sm:$0xff]  ;;  %v2448_v58 = vpack.c.bf16 %v889_v53, %v887_v52  ;;  %v186_v53 = vld [vmem:[#allocation5 + $0x98] sm:$0xff]  ;;  %v917_v9 = vld [vmem:[#allocation7 + $0x310] sm:$0xff] }
  0x5e   :  { %v184_v52 = vld [vmem:[#allocation5 + $0x88] sm:$0xff] }
  0x5f   :  { %v2138_v55 = vpack.c.bf16 %v186_v53, %v184_v52  ;;  %v203_v52 = vld [vmem:[#allocation5 + $0x120] sm:$0xff]  ;;  %v205_v53 = vld [vmem:[#allocation5 + $0x130] sm:$0xff] }
  0x60   :  { %2409 = vmatpush1.bf16.msra.mxu0 %v2408_v59  ;;  %v893_v59 = vld [vmem:[#allocation7 + $0x250] sm:$0xff] }
  0x61   :  { %2411 = vmatprep.subr.bf16.mxu0 %v2410_v60  ;;  %v896_v60 = vld [vmem:[#allocation7 + $0x268] sm:$0xff] }
  0x64   :  { %2413 = vmatpush1.bf16.msra.mxu0 %v2412_v1  ;;  %v170_v1 = vld [vmem:[#allocation5 + $0x18] sm:$0xff] }
  0x65   :  { %2415 = vmatprep.subr.bf16.mxu0 %v2414_v2  ;;  %v898_v2 = vld [vmem:[#allocation7 + $0x278] sm:$0xff]  ;;  %v2122_v3 = vpack.c.bf16 %v170_v1, %v168_v0  ;;  %v188_v0 = vld [vmem:[#allocation5 + $0xa8] sm:$0xff] }
  0x66   :  { %v2454_v12 = vpack.c.bf16 %v898_v2, %v896_v60  ;;  %v911_v60 = vld [vmem:[#allocation7 + $0x2e0] sm:$0xff]  ;;  %v190_v1 = vld [vmem:[#allocation5 + $0xb8] sm:$0xff] }
  0x67   :  { %2123 = vmatprep.subr.bf16.mxu1 %v2122_v3  ;;  %v918_v2 = vld [vmem:[#allocation7 + $0x318] sm:$0xff]  ;;  %v2142_v3 = vpack.c.bf16 %v190_v1, %v188_v0  ;;  %v207_v0 = vld [vmem:[#allocation5 + $0x140] sm:$0xff]  ;;  %v209_v1 = vld [vmem:[#allocation5 + $0x150] sm:$0xff] }
  0x68   :  { %2417 = vmatpush1.bf16.msra.mxu0 %v2416_v7  ;;  %v2124_v7 = vpack.c.bf16 %v169_v5, %v167_v4  ;;  %v187_v4 = vld [vmem:[#allocation5 + $0xa0] sm:$0xff]  ;;  %v189_v5 = vld [vmem:[#allocation5 + $0xb0] sm:$0xff] }
  0x69   :  { %2419 = vmatprep.subr.bf16.mxu0 %v2418_v8  ;;  %v2452_v8 = vpack.c.bf16 %v893_v59, %v891_v57  ;;  %v185_v57 = vld [vmem:[#allocation5 + $0x90] sm:$0xff]  ;;  %v2144_v6 = vpack.c.bf16 %v189_v5, %v187_v4  ;;  %v935_v4 = vld [vmem:[#allocation7 + $0x3a0] sm:$0xff] }
  0x6a   :  { %2125 = vmatpush1.bf16.msra.mxu1 %v2124_v7  ;;  %v937_v5 = vld [vmem:[#allocation7 + $0x3b0] sm:$0xff] }
  0x6c   :  { %2421 = vmatpush1.bf16.msra.mxu0 %v2420_v13  ;;  %v808_v13 = vld [vmem:[#allocation2 + $0xc8] sm:$0xff] }
  0x6d   :  { %2423 = vmatprep.subr.bf16.mxu0 %v2422_v14  ;;  %v172_v14 = vld [vmem:[#allocation5 + $0x28] sm:$0xff] }
  0x6e   :  { %v2126_v17 = vpack.c.bf16 %v174_v15, %v172_v14  ;;  %v922_v14 = vld [vmem:[#allocation7 + $0x338] sm:$0xff] }
  0x70   :  { %2425 = vmatpush1.bf16.msra.mxu0 %v2424_v19  ;;  %v173_v19 = vld [vmem:[#allocation5 + $0x30] sm:$0xff]  ;;  %2127 = vmatprep.subr.bf16.mxu1 %v2126_v17 }
  0x71   :  { %2427 = vmatprep.subr.bf16.mxu0 %v2426_v20  ;;  %v899_v20 = vld [vmem:[#allocation7 + $0x280] sm:$0xff]  ;;  %v2128_v21 = vpack.c.bf16 %v173_v19, %v171_v18  ;;  %v193_v17 = vld [vmem:[#allocation5 + $0xd0] sm:$0xff] }
  0x72   :  { %v2460_v35 = vpack.c.bf16 %v901_v23, %v899_v20  ;;  %v919_v20 = vld [vmem:[#allocation7 + $0x320] sm:$0xff]  ;;  %v924_v23 = vld [vmem:[#allocation7 + $0x348] sm:$0xff] }
  0x73   :  { %2129 = vmatpush1.bf16.msra.mxu1 %v2128_v21  ;;  %v921_v21 = vld [vmem:[#allocation7 + $0x330] sm:$0xff] }
  0x74   :  { %2429 = vmatpush1.bf16.msra.mxu0 %v2428_v25  ;;  %v807_v25 = vld [vmem:[#allocation2 + $0xc0] sm:$0xff] }
  0x75   :  { %2431 = vmatprep.subr.bf16.mxu0 %v2430_v26  ;;  %v2458_v26 = vpack.c.bf16 %v902_v16, %v900_v10  ;;  %v191_v16 = vld [vmem:[#allocation5 + $0xc0] sm:$0xff] }
  0x76   :  { %v2148_v18 = vpack.c.bf16 %v193_v17, %v191_v16  ;;  %v939_v16 = vld [vmem:[#allocation7 + $0x3c0] sm:$0xff] }
  0x78   :  { %2433 = vmatpush1.bf16.msra.mxu0 %v2432_v31  ;;  %v2130_v31 = vpack.c.bf16 %v178_v29, %v176_v28  ;;  %v195_v28 = vld [vmem:[#allocation5 + $0xe0] sm:$0xff]  ;;  %v197_v29 = vld [vmem:[#allocation5 + $0xf0] sm:$0xff] }
  0x79   :  { %2435 = vmatprep.subr.bf16.mxu0 %v2434_v32  ;;  %v175_v32 = vld [vmem:[#allocation5 + $0x40] sm:$0xff] }
  0x7a   :  { %v2132_v34 = vpack.c.bf16 %v177_v33, %v175_v32  ;;  %2131 = vmatprep.subr.bf16.mxu1 %v2130_v31  ;;  %v2480_v31 = vpack.c.bf16 %v921_v21, %v919_v20  ;;  %v923_v32 = vld [vmem:[#allocation7 + $0x340] sm:$0xff]  ;;  %v925_v33 = vld [vmem:[#allocation7 + $0x350] sm:$0xff]  ;;  %v218_v20 = vld [vmem:[#allocation5 + $0x198] sm:$0xff] }
  0x7b   :  { %v944_v21 = vld [vmem:[#allocation7 + $0x3e8] sm:$0xff] }
  0x7c   :  { %2437 = vmatpush1.bf16.msra.mxu0 %v2436_v37  ;;  %v905_v37 = vld [vmem:[#allocation7 + $0x2b0] sm:$0xff]  ;;  %2133 = vmatpush1.bf16.msra.mxu1 %v2132_v34 }
  0x7d   :  { %2439 = vmatprep.subr.bf16.mxu0 %v2438_v38  ;;  %v2462_v38 = vpack.c.bf16 %v906_v30, %v904_v24  ;;  %v2464_v47 = vpack.c.bf16 %v905_v37, %v903_v36  ;;  %v196_v24 = vld [vmem:[#allocation5 + $0xe8] sm:$0xff]  ;;  %v2152_v30 = vpack.c.bf16 %v197_v29, %v195_v28  ;;  %v202_v37 = vld [vmem:[#allocation5 + $0x118] sm:$0xff] }
  0x7e   :  { %v200_v36 = vld [vmem:[#allocation5 + $0x108] sm:$0xff] }
  0x80   :  { %2441 = vmatpush1.bf16.msra.mxu0 %v2440_v43  ;;  %v2134_v43 = vpack.c.bf16 %v182_v41, %v180_v40  ;;  %v199_v40 = vld [vmem:[#allocation5 + $0x100] sm:$0xff]  ;;  %v201_v41 = vld [vmem:[#allocation5 + $0x110] sm:$0xff] }
  0x81   :  { %2443 = vmatprep.subr.bf16.mxu0 %v2442_v44  ;;  %v179_v44 = vld [vmem:[#allocation5 + $0x60] sm:$0xff] }
  0x82   :  { %v2136_v46 = vpack.c.bf16 %v181_v45, %v179_v44  ;;  %2135 = vmatprep.subr.bf16.mxu1 %v2134_v43  ;;  %v2484_v43 = vpack.c.bf16 %v925_v33, %v923_v32  ;;  %v927_v44 = vld [vmem:[#allocation7 + $0x360] sm:$0xff]  ;;  %v929_v45 = vld [vmem:[#allocation7 + $0x370] sm:$0xff]  ;;  %v222_v32 = vld [vmem:[#allocation5 + $0x1b8] sm:$0xff] }
  0x83   :  { %1140 = vmatmul.mubr.f32.vlgmr.msra.gmra.mrb[2].mxu0 %v783_v49  ;;  %v909_v49 = vld [vmem:[#allocation7 + $0x2d0] sm:$0xff]  ;;  %v948_v33 = vld [vmem:[#allocation7 + $0x408] sm:$0xff] }
  0x84   :  { %2445 = vmatpush1.bf16.msra.mxu0 %v2444_v50  ;;  %1145 = vmatprep.mubr.f32.mxu0 %v792_v54  ;;  %v2466_v50 = vpack.c.bf16 %v910_v42, %v908_v39  ;;  %v914_v54 = vld [vmem:[#allocation7 + $0x2f8] sm:$0xff]  ;;  %v2468_v59 = vpack.c.bf16 %v909_v49, %v907_v48  ;;  %v2154_v39 = vpack.c.bf16 %v202_v37, %v200_v36  ;;  %v204_v48 = vld [vmem:[#allocation5 + $0x128] sm:$0xff]  ;;  %v219_v36 = vld [vmem:[#allocation5 + $0x1a0] sm:$0xff] }
  0x85   :  { %2447 = vmatprep.subr.bf16.mxu0 %v2446_v51  ;;  %v912_v51 = vld [vmem:[#allocation7 + $0x2e8] sm:$0xff]  ;;  %2137 = vmatpush1.bf16.msra.mxu1 %v2136_v46  ;;  %v2156_v42 = vpack.c.bf16 %v201_v41, %v199_v40  ;;  %v206_v49 = vld [vmem:[#allocation5 + $0x138] sm:$0xff]  ;;  %v221_v37 = vld [vmem:[#allocation5 + $0x1b0] sm:$0xff] }
  0x86   :  { %2139 = vmatprep.subr.bf16.mxu1 %v2138_v55  ;;  %v2488_v55 = vpack.c.bf16 %v929_v45, %v927_v44  ;;  %v2176_v40 = vpack.c.bf16 %v221_v37, %v219_v36  ;;  %v226_v44 = vld [vmem:[#allocation5 + $0x1d8] sm:$0xff]  ;;  %v952_v45 = vld [vmem:[#allocation7 + $0x428] sm:$0xff] }
  0x87   :  { %1146 = vmatmul.mubr.f32.gmra.mrb[4].mxu0 %v791_v61  ;;  %v913_v61 = vld [vmem:[#allocation7 + $0x2f0] sm:$0xff] }
  0x88   :  { %2449 = vmatpush1.bf16.msra.mxu0 %v2448_v58  ;;  %1151 = vmatprep.mubr.f32.mxu0 %v800_v63  ;;  %v2140_v58 = vpack.c.bf16 %v185_v57, %v183_v56  ;;  %v916_v63 = vld [vmem:[#allocation7 + $0x308] sm:$0xff]  ;;  %v2472_v7 = vpack.c.bf16 %v913_v61, %v911_v60  ;;  %v931_v56 = vld [vmem:[#allocation7 + $0x380] sm:$0xff]  ;;  %v933_v57 = vld [vmem:[#allocation7 + $0x390] sm:$0xff] }
  0x89   :  { %2451 = vmatprep.subr.bf16.mxu0 %v2450_v62  ;;  %v2470_v62 = vpack.c.bf16 %v914_v54, %v912_v51  ;;  %v2474_v10 = vpack.c.bf16 %v918_v2, %v916_v63  ;;  %v2158_v51 = vpack.c.bf16 %v206_v49, %v204_v48  ;;  %v2160_v54 = vpack.c.bf16 %v205_v53, %v203_v52  ;;  %v208_v60 = vld [vmem:[#allocation5 + $0x148] sm:$0xff]  ;;  %v210_v61 = vld [vmem:[#allocation5 + $0x158] sm:$0xff]  ;;  %v223_v48 = vld [vmem:[#allocation5 + $0x1c0] sm:$0xff] }
  0x8a   :  { %2141 = vmatpush1.bf16.msra.mxu1 %v2140_v58  ;;  %v2162_v63 = vpack.c.bf16 %v210_v61, %v208_v60  ;;  %v2164_v2 = vpack.c.bf16 %v209_v1, %v207_v0  ;;  %v785_v49 = vld [vmem:[#allocation2 + $0x10] sm:$0xff]  ;;  %v951_v52 = vld [vmem:[#allocation7 + $0x420] sm:$0xff]  ;;  %v230_v60 = vld [vmem:[#allocation5 + $0x1f8] sm:$0xff] }
  0x8b   :  { %1152 = vmatmul.mubr.f32.gmra.mrb[6].mxu0 %v799_v11  ;;  %2143 = vmatprep.subr.bf16.mxu1 %v2142_v3  ;;  %v920_v11 = vld [vmem:[#allocation7 + $0x328] sm:$0xff]  ;;  %v2492_v3 = vpack.c.bf16 %v933_v57, %v931_v56  ;;  %v953_v53 = vld [vmem:[#allocation7 + $0x430] sm:$0xff]  ;;  %v425_v56 = vlaneseq  ;;  %v958_v61 = vld [vmem:[#allocation7 + $0x458] sm:$0xff] }
  0x8c   :  { %2453 = vmatpush1.bf16.msra.mxu0 %v2452_v8  ;;  %1157 = vmatprep.mubr.f32.mxu0 %v808_v13  ;;  %v915_v8 = vld [vmem:[#allocation7 + $0x300] sm:$0xff]  ;;  %v194_v13 = vld [vmem:[#allocation5 + $0xd8] sm:$0xff]  ;;  %v229_v0 = vld [vmem:[#allocation5 + $0x1f0] sm:$0xff] }
  0x8d   :  { %2455 = vmatprep.subr.bf16.mxu0 %v2454_v12  ;;  %v192_v12 = vld [vmem:[#allocation5 + $0xc8] sm:$0xff]  ;;  %v2476_v19 = vpack.c.bf16 %v917_v9, %v915_v8  ;;  %v214_v9 = vld [vmem:[#allocation5 + $0x178] sm:$0xff]  ;;  %v2978_v1 = vshrl.u32 %v425_v56, 7  ;;  %vm780_vm3 = vcmp.lt.s32.totalorder %v425_v56, 256 }
  0x8e   :  { %2145 = vmatpush1.bf16.msra.mxu1 %v2144_v6  ;;  %v2146_v15 = vpack.c.bf16 %v194_v13, %v192_v12  ;;  %v212_v8 = vld [vmem:[#allocation5 + $0x168] sm:$0xff]  ;;  %v211_v12 = vld [vmem:[#allocation5 + $0x160] sm:$0xff]  ;;  %v213_v13 = vld [vmem:[#allocation5 + $0x170] sm:$0xff] }
  0x8f   :  { %1158 = vmatmul.mubr.f32.gmra.mrb[8].mxu0 %v807_v25  ;;  %v198_v25 = vld [vmem:[#allocation5 + $0xf8] sm:$0xff] }
  0x90   :  { %2457 = vmatpush1.bf16.msra.mxu0 %v2456_v22  ;;  %1228 = vmatprep.mubr.f32.mxu0 %v786_v27  ;;  %v2478_v22 = vpack.c.bf16 %v922_v14, %v920_v11  ;;  %v2150_v27 = vpack.c.bf16 %v198_v25, %v196_v24  ;;  %v2166_v11 = vpack.c.bf16 %v214_v9, %v212_v8  ;;  %v215_v24 = vld [vmem:[#allocation5 + $0x180] sm:$0xff]  ;;  %v217_v25 = vld [vmem:[#allocation5 + $0x190] sm:$0xff]  ;;  %v802_v8 = vld [vmem:[#allocation2 + $0x98] sm:$0xff]  ;;  %v431_v9 = vsub.s32 1, %v2978_v1 }
  0x91   :  { %2459 = vmatprep.subr.bf16.mxu0 %v2458_v26  ;;  %2147 = vmatprep.subr.bf16.mxu1 %v2146_v15  ;;  %v926_v26 = vld [vmem:[#allocation7 + $0x358] sm:$0xff]  ;;  %v2168_v14 = vpack.c.bf16 %v213_v13, %v211_v12  ;;  %v2496_v15 = vpack.c.bf16 %v937_v5, %v935_v4  ;;  %v2172_v28 = vpack.c.bf16 %v217_v25, %v215_v24  ;;  %v232_v12 = vld [vmem:[#allocation5 + $0x208] sm:$0xff]  ;;  %v961_v24 = vld [vmem:[#allocation7 + $0x470] sm:$0xff] }
  0x92   :  { %2149 = vmatpush1.bf16.msra.mxu1 %v2148_v18  ;;  %v2482_v34 = vpack.c.bf16 %v926_v26, %v924_v23  ;;  %v941_v18 = vld [vmem:[#allocation7 + $0x3d0] sm:$0xff]  ;;  %v2512_v5 = vpack.c.bf16 %v953_v53, %v951_v52  ;;  %v234_v13 = vld [vmem:[#allocation5 + $0x218] sm:$0xff]  ;;  %v964_v25 = vld [vmem:[#allocation7 + $0x488] sm:$0xff]  ;;  %v439_v52 = vsub.s32 3, %v2978_v1 }
  0x93   :  { %2151 = vmatprep.subr.bf16.mxu1 %v2150_v27  ;;  %v2500_v26 = vpack.c.bf16 %v941_v18, %v939_v16  ;;  %v943_v27 = vld [vmem:[#allocation7 + $0x3e0] sm:$0xff] }
  0x94   :  { %2461 = vmatpush1.bf16.msra.mxu0 %v2460_v35  ;;  %v928_v35 = vld [vmem:[#allocation7 + $0x368] sm:$0xff]  ;;  %v231_v18 = vld [vmem:[#allocation5 + $0x200] sm:$0xff] }
  0x95   :  { %2463 = vmatprep.subr.bf16.mxu0 %v2462_v38  ;;  %v930_v38 = vld [vmem:[#allocation7 + $0x378] sm:$0xff] }
  0x96   :  { %2153 = vmatpush1.bf16.msra.mxu1 %v2152_v30  ;;  %v2486_v46 = vpack.c.bf16 %v930_v38, %v928_v35  ;;  %v945_v30 = vld [vmem:[#allocation7 + $0x3f0] sm:$0xff] }
  0x97   :  { %2155 = vmatprep.subr.bf16.mxu1 %v2154_v39  ;;  %v2504_v38 = vpack.c.bf16 %v945_v30, %v943_v27  ;;  %v947_v39 = vld [vmem:[#allocation7 + $0x400] sm:$0xff]  ;;  %v238_v30 = vld [vmem:[#allocation5 + $0x238] sm:$0xff] }
  0x98   :  { %2465 = vmatpush1.bf16.msra.mxu0 %v2464_v47  ;;  %v932_v47 = vld [vmem:[#allocation7 + $0x388] sm:$0xff] }
  0x99   :  { %2467 = vmatprep.subr.bf16.mxu0 %v2466_v50  ;;  %v934_v50 = vld [vmem:[#allocation7 + $0x398] sm:$0xff] }
  0x9a   :  { %2157 = vmatpush1.bf16.msra.mxu1 %v2156_v42  ;;  %v2490_v58 = vpack.c.bf16 %v934_v50, %v932_v47  ;;  %v949_v42 = vld [vmem:[#allocation7 + $0x410] sm:$0xff] }
  0x9b   :  { %2159 = vmatprep.subr.bf16.mxu1 %v2158_v51  ;;  %v225_v50 = vld [vmem:[#allocation5 + $0x1d0] sm:$0xff]  ;;  %v2508_v51 = vpack.c.bf16 %v949_v42, %v947_v39  ;;  %v968_v39 = vld [vmem:[#allocation7 + $0x4a8] sm:$0xff] }
  0x9c   :  { %2469 = vmatpush1.bf16.msra.mxu0 %v2468_v59  ;;  %v936_v59 = vld [vmem:[#allocation7 + $0x3a8] sm:$0xff] }
  0x9d   :  { %2471 = vmatprep.subr.bf16.mxu0 %v2470_v62  ;;  %v938_v62 = vld [vmem:[#allocation7 + $0x3b8] sm:$0xff]  ;;  %v788_v42 = vld [vmem:[#allocation2 + $0x28] sm:$0xff] }
  0x9e   :  { %2161 = vmatpush1.bf16.msra.mxu1 %v2160_v54  ;;  %v2494_v6 = vpack.c.bf16 %v938_v62, %v936_v59  ;;  %v956_v54 = vld [vmem:[#allocation7 + $0x448] sm:$0xff] }
  0x9f   :  { %2163 = vmatprep.subr.bf16.mxu1 %v2162_v63  ;;  %v228_v59 = vld [vmem:[#allocation5 + $0x1e8] sm:$0xff]  ;;  %v227_v63 = vld [vmem:[#allocation5 + $0x1e0] sm:$0xff] }
  0xa0   :  { %2473 = vmatpush1.bf16.msra.mxu0 %v2472_v7  ;;  %v940_v7 = vld [vmem:[#allocation7 + $0x3c8] sm:$0xff]  ;;  %v2182_v62 = vpack.c.bf16 %v230_v60, %v228_v59  ;;  %v2184_v4 = vpack.c.bf16 %v229_v0, %v227_v63  ;;  %v969_v60 = vld [vmem:[#allocation7 + $0x4b0] sm:$0xff] }
  0xa1   :  { %2475 = vmatprep.subr.bf16.mxu0 %v2474_v10  ;;  %v942_v10 = vld [vmem:[#allocation7 + $0x3d8] sm:$0xff]  ;;  %v972_v0 = vld [vmem:[#allocation7 + $0x4c8] sm:$0xff] }
  0xa2   :  { %2165 = vmatpush1.bf16.msra.mxu1 %v2164_v2  ;;  %v2498_v17 = vpack.c.bf16 %v942_v10, %v940_v7  ;;  %v955_v2 = vld [vmem:[#allocation7 + $0x440] sm:$0xff]  ;;  %v793_v7 = vld [vmem:[#allocation2 + $0x50] sm:$0xff]  ;;  %v2514_v10 = vpack.c.bf16 %v958_v61, %v956_v54  ;;  %v248_v61 = vld [vmem:[#allocation5 + $0x288] sm:$0xff] }
  0xa3   :  { %2167 = vmatprep.subr.bf16.mxu1 %v2166_v11  ;;  %v2984_v11 = vld [vmem:[%s3117_s1] sm:$0xff] }
  0xa4   :  { %2477 = vmatpush1.bf16.msra.mxu0 %v2476_v19  ;;  %v216_v19 = vld [vmem:[#allocation5 + $0x188] sm:$0xff]  ;;  %v432_v16 = vrot.slane %v2984_v11, %v431_v9  ;;  %v967_v54 = vld [vmem:[#allocation7 + $0x4a0] sm:$0xff]  ;;  %v440_v63 = vrot.slane %v2984_v11, %v439_v52 }
  0xa5   :  { %2479 = vmatprep.subr.bf16.mxu0 %v2478_v22  ;;  %v946_v22 = vld [vmem:[#allocation7 + $0x3f8] sm:$0xff]  ;;  %v2170_v23 = vpack.c.bf16 %v218_v20, %v216_v19  ;;  %v233_v19 = vld [vmem:[#allocation5 + $0x210] sm:$0xff]  ;;  %v959_v20 = vld [vmem:[#allocation7 + $0x460] sm:$0xff] }
  0xa6   :  { %2169 = vmatpush1.bf16.msra.mxu1 %v2168_v14  ;;  %v2502_v29 = vpack.c.bf16 %v946_v22, %v944_v21  ;;  %v427_v14 = vsub.s32 0, %v2978_v1  ;;  %v2188_v22 = vpack.c.bf16 %v233_v19, %v231_v18  ;;  %540 = vmatprep.mubr.f32.mxu1 %v432_v16  ;;  %v2520_v37 = vpack.c.bf16 %v961_v24, %v959_v20  ;;  %v976_v16 = vld [vmem:[#allocation7 + $0x4e8] sm:$0xff]  ;;  %v975_v20 = vld [vmem:[#allocation7 + $0x4e0] sm:$0xff] }
  0xa7   :  { %2171 = vmatprep.subr.bf16.mxu1 %v2170_v23  ;;  %v988_v52 = vld [vmem:[#allocation7 + $0x548] sm:$0xff] }
  0xa8   :  { %2481 = vmatpush1.bf16.msra.mxu0 %v2480_v31  ;;  %v220_v31 = vld [vmem:[#allocation5 + $0x1a8] sm:$0xff]  ;;  %v428_v21 = vrot.slane %v2984_v11, %v427_v14 }
  0xa9   :  { %2483 = vmatprep.subr.bf16.mxu0 %v2482_v34  ;;  %v950_v34 = vld [vmem:[#allocation7 + $0x418] sm:$0xff]  ;;  %v2174_v35 = vpack.c.bf16 %v222_v32, %v220_v31 }
  0xaa   :  { %2173 = vmatpush1.bf16.msra.mxu1 %v2172_v28  ;;  %v2506_v41 = vpack.c.bf16 %v950_v34, %v948_v33  ;;  %v810_v28 = vld [vmem:[#allocation2 + $0xd8] sm:$0xff]  ;;  %v235_v33 = vld [vmem:[#allocation5 + $0x220] sm:$0xff]  ;;  %v237_v34 = vld [vmem:[#allocation5 + $0x230] sm:$0xff] }
  0xab   :  { %2175 = vmatprep.subr.bf16.mxu1 %v2174_v35  ;;  %v966_v31 = vld [vmem:[#allocation7 + $0x498] sm:$0xff]  ;;  %v963_v35 = vld [vmem:[#allocation7 + $0x480] sm:$0xff]  ;;  %v2192_v36 = vpack.c.bf16 %v237_v34, %v235_v33 }
  0xac   :  { %2485 = vmatpush1.bf16.msra.mxu0 %v2484_v43  ;;  %v224_v43 = vld [vmem:[#allocation5 + $0x1c8] sm:$0xff]  ;;  %v255_v34 = vld [vmem:[#allocation5 + $0x2c0] sm:$0xff] }
  0xad   :  { %2487 = vmatprep.subr.bf16.mxu0 %v2486_v46  ;;  %v954_v46 = vld [vmem:[#allocation7 + $0x438] sm:$0xff]  ;;  %v2178_v47 = vpack.c.bf16 %v226_v44, %v224_v43  ;;  %v240_v43 = vld [vmem:[#allocation5 + $0x248] sm:$0xff] }
  0xae   :  { %2177 = vmatpush1.bf16.msra.mxu1 %v2176_v40  ;;  %v2510_v57 = vpack.c.bf16 %v954_v46, %v952_v45  ;;  %v809_v40 = vld [vmem:[#allocation2 + $0xd0] sm:$0xff]  ;;  %v242_v44 = vld [vmem:[#allocation5 + $0x258] sm:$0xff] }
  0xaf   :  { %2179 = vmatprep.subr.bf16.mxu1 %v2178_v47  ;;  %v970_v45 = vld [vmem:[#allocation7 + $0x4b8] sm:$0xff]  ;;  %v2194_v46 = vpack.c.bf16 %v242_v44, %v240_v43  ;;  %v239_v47 = vld [vmem:[#allocation5 + $0x240] sm:$0xff] }
  0xb0   :  { %2489 = vmatpush1.bf16.msra.mxu0 %v2488_v55  ;;  %v2180_v55 = vpack.c.bf16 %v225_v50, %v223_v48  ;;  %v241_v48 = vld [vmem:[#allocation5 + $0x250] sm:$0xff]  ;;  %v244_v50 = vld [vmem:[#allocation5 + $0x268] sm:$0xff]  ;;  %v2526_v59 = vpack.c.bf16 %v970_v45, %v968_v39  ;;  %v262_v39 = vld [vmem:[#allocation5 + $0x2f8] sm:$0xff] }
  0xb1   :  { %2491 = vmatprep.subr.bf16.mxu0 %v2490_v58  ;;  %v794_v58 = vld [vmem:[#allocation2 + $0x58] sm:$0xff]  ;;  %v983_v44 = vld [vmem:[#allocation7 + $0x520] sm:$0xff] }
  0xb2   :  { %2181 = vmatpush1.bf16.msra.mxu1 %v2180_v55 }
  0xb3   :  { %2183 = vmatprep.subr.bf16.mxu1 %v2182_v62  ;;  %v250_v62 = vld [vmem:[#allocation5 + $0x298] sm:$0xff] }
  0xb4   :  { %2493 = vmatpush1.bf16.msra.mxu0 %v2492_v3  ;;  %v957_v3 = vld [vmem:[#allocation7 + $0x450] sm:$0xff] }
  0xb5   :  { %2495 = vmatprep.subr.bf16.mxu0 %v2494_v6  ;;  %v960_v6 = vld [vmem:[#allocation7 + $0x468] sm:$0xff]  ;;  %v2516_v23 = vpack.c.bf16 %v957_v3, %v955_v2  ;;  %v974_v2 = vld [vmem:[#allocation7 + $0x4d8] sm:$0xff] }
  0xb6   :  { %2185 = vmatpush1.bf16.msra.mxu1 %v2184_v4  ;;  %v2528_v4 = vpack.c.bf16 %v969_v60, %v967_v54  ;;  %v265_v60 = vld [vmem:[#allocation5 + $0x310] sm:$0xff] }
  0xb8   :  { %2497 = vmatpush1.bf16.msra.mxu0 %v2496_v15  ;;  %v962_v15 = vld [vmem:[#allocation7 + $0x478] sm:$0xff] }
  0xb9   :  { %2499 = vmatprep.subr.bf16.mxu0 %v2498_v17  ;;  %v2186_v17 = vpack.c.bf16 %v234_v13, %v232_v12  ;;  %v2518_v27 = vpack.c.bf16 %v962_v15, %v960_v6  ;;  %541 = vmatmul.mubr.f32.vlgmr.msra.gmra.mrb[0].mxu1 %v428_v21  ;;  %v2202_v6 = vpack.c.bf16 %v250_v62, %v248_v61  ;;  %v973_v12 = vld [vmem:[#allocation7 + $0x4d0] sm:$0xff]  ;;  %v252_v13 = vld [vmem:[#allocation5 + $0x2a8] sm:$0xff]  ;;  %v254_v15 = vld [vmem:[#allocation5 + $0x2b8] sm:$0xff] }
  0xba   :  { %611 = vmatprep.mubr.f32.mxu1 %v440_v63  ;;  %v2206_v21 = vpack.c.bf16 %v254_v15, %v252_v13  ;;  %v989_v62 = vld [vmem:[#allocation7 + $0x550] sm:$0xff]  ;;  %v268_v63 = vld [vmem:[#allocation5 + $0x328] sm:$0xff] }
  0xbb   :  { %2187 = vmatprep.subr.bf16.mxu1 %v2186_v17  ;;  %v978_v17 = vld [vmem:[#allocation7 + $0x4f8] sm:$0xff]  ;;  %v993_v13 = vld [vmem:[#allocation7 + $0x570] sm:$0xff]  ;;  %v272_v15 = vld [vmem:[#allocation5 + $0x348] sm:$0xff] }
  0xbc   :  { %2501 = vmatpush1.bf16.msra.mxu0 %v2500_v26  ;;  %v801_v26 = vld [vmem:[#allocation2 + $0x90] sm:$0xff]  ;;  %2189 = vmatpush1.bf16.msra.mxu1 %v2188_v22  ;;  %v251_v22 = vld [vmem:[#allocation5 + $0x2a0] sm:$0xff]  ;;  %v2534_v24 = vpack.c.bf16 %v978_v17, %v976_v16  ;;  %v274_v16 = vld [vmem:[#allocation5 + $0x358] sm:$0xff] }
  0xbd   :  { %2503 = vmatprep.subr.bf16.mxu0 %v2502_v29  ;;  %v236_v29 = vld [vmem:[#allocation5 + $0x228] sm:$0xff] }
  0xbe   :  { %v2190_v32 = vpack.c.bf16 %v238_v30, %v236_v29  ;;  %v982_v29 = vld [vmem:[#allocation7 + $0x518] sm:$0xff]  ;;  %v996_v17 = vld [vmem:[#allocation7 + $0x588] sm:$0xff] }
  0xc0   :  { %2505 = vmatpush1.bf16.msra.mxu0 %v2504_v38  ;;  %v965_v38 = vld [vmem:[#allocation7 + $0x490] sm:$0xff]  ;;  %2191 = vmatprep.subr.bf16.mxu1 %v2190_v32  ;;  %v979_v32 = vld [vmem:[#allocation7 + $0x500] sm:$0xff] }
  0xc1   :  { %2507 = vmatprep.subr.bf16.mxu0 %v2506_v41  ;;  %v2522_v41 = vpack.c.bf16 %v966_v31, %v964_v25  ;;  %2193 = vmatpush1.bf16.msra.mxu1 %v2192_v36  ;;  %v2524_v53 = vpack.c.bf16 %v965_v38, %v963_v35  ;;  %v977_v25 = vld [vmem:[#allocation7 + $0x4f0] sm:$0xff]  ;;  %v260_v38 = vld [vmem:[#allocation5 + $0x2e8] sm:$0xff] }
  0xc2   :  { %2195 = vmatprep.subr.bf16.mxu1 %v2194_v46  ;;  %v2536_v31 = vpack.c.bf16 %v977_v25, %v975_v20  ;;  %v257_v35 = vld [vmem:[#allocation5 + $0x2d0] sm:$0xff]  ;;  %v2214_v45 = vpack.c.bf16 %v262_v39, %v260_v38  ;;  %v259_v46 = vld [vmem:[#allocation5 + $0x2e0] sm:$0xff]  ;;  %v280_v39 = vld [vmem:[#allocation5 + $0x388] sm:$0xff] }
  0xc3   :  { %1229 = vmatmul.mubr.f32.vlgmr.msra.gmra.mrb[2].mxu0 %v785_v49  ;;  %v2196_v49 = vpack.c.bf16 %v241_v48, %v239_v47  ;;  %v261_v47 = vld [vmem:[#allocation5 + $0x2f0] sm:$0xff] }
  0xc4   :  { %2509 = vmatpush1.bf16.msra.mxu0 %v2508_v51  ;;  %1234 = vmatprep.mubr.f32.mxu0 %v794_v58  ;;  %v246_v51 = vld [vmem:[#allocation5 + $0x278] sm:$0xff]  ;;  %v245_v58 = vld [vmem:[#allocation5 + $0x270] sm:$0xff]  ;;  %v2216_v54 = vpack.c.bf16 %v261_v47, %v259_v46  ;;  %v279_v47 = vld [vmem:[#allocation5 + $0x380] sm:$0xff] }
  0xc5   :  { %2511 = vmatprep.subr.bf16.mxu0 %v2510_v57  ;;  %v2198_v55 = vpack.c.bf16 %v246_v51, %v244_v50  ;;  %v243_v57 = vld [vmem:[#allocation5 + $0x260] sm:$0xff]  ;;  %2197 = vmatpush1.bf16.msra.mxu1 %v2196_v49  ;;  %v985_v49 = vld [vmem:[#allocation7 + $0x530] sm:$0xff]  ;;  %v264_v50 = vld [vmem:[#allocation5 + $0x308] sm:$0xff] }
  0xc6   :  { %v2200_v3 = vpack.c.bf16 %v245_v58, %v243_v57  ;;  %v266_v51 = vld [vmem:[#allocation5 + $0x318] sm:$0xff]  ;;  %v987_v57 = vld [vmem:[#allocation7 + $0x540] sm:$0xff]  ;;  %v1001_v38 = vld [vmem:[#allocation7 + $0x5b0] sm:$0xff] }
  0xc7   :  { %1235 = vmatmul.mubr.f32.gmra.mrb[4].mxu0 %v793_v7  ;;  %2199 = vmatprep.subr.bf16.mxu1 %v2198_v55  ;;  %v247_v7 = vld [vmem:[#allocation5 + $0x280] sm:$0xff]  ;;  %v2544_v55 = vpack.c.bf16 %v985_v49, %v983_v44  ;;  %v2218_v58 = vpack.c.bf16 %v266_v51, %v264_v50  ;;  %v1005_v50 = vld [vmem:[#allocation7 + $0x5d0] sm:$0xff]  ;;  %v284_v51 = vld [vmem:[#allocation5 + $0x3a8] sm:$0xff] }
  0xc8   :  { %2513 = vmatpush1.bf16.msra.mxu0 %v2512_v5  ;;  %1240 = vmatprep.mubr.f32.mxu0 %v802_v8  ;;  %v971_v5 = vld [vmem:[#allocation7 + $0x4c0] sm:$0xff]  ;;  %v249_v8 = vld [vmem:[#allocation5 + $0x290] sm:$0xff] }
  0xc9   :  { %2515 = vmatprep.subr.bf16.mxu0 %v2514_v10  ;;  %v2530_v10 = vpack.c.bf16 %v974_v2, %v972_v0  ;;  %2201 = vmatpush1.bf16.msra.mxu1 %v2200_v3  ;;  %v2204_v18 = vpack.c.bf16 %v249_v8, %v247_v7  ;;  %v2532_v19 = vpack.c.bf16 %v973_v12, %v971_v5  ;;  %v270_v0 = vld [vmem:[#allocation5 + $0x338] sm:$0xff]  ;;  %v992_v2 = vld [vmem:[#allocation7 + $0x568] sm:$0xff]  ;;  %v267_v8 = vld [vmem:[#allocation5 + $0x320] sm:$0xff] }
  0xca   :  { %2203 = vmatprep.subr.bf16.mxu1 %v2202_v6  ;;  %v994_v3 = vld [vmem:[#allocation7 + $0x578] sm:$0xff]  ;;  %v2548_v5 = vpack.c.bf16 %v989_v62, %v987_v57  ;;  %v991_v6 = vld [vmem:[#allocation7 + $0x560] sm:$0xff]  ;;  %v2222_v7 = vpack.c.bf16 %v270_v0, %v268_v63  ;;  %v1009_v63 = vld [vmem:[#allocation7 + $0x5f0] sm:$0xff] }
  0xcb   :  { %1241 = vmatmul.mubr.f32.gmra.mrb[6].mxu0 %v801_v26  ;;  %v256_v26 = vld [vmem:[#allocation5 + $0x2c8] sm:$0xff]  ;;  %v2550_v12 = vpack.c.bf16 %v994_v3, %v992_v2  ;;  %v2552_v20 = vpack.c.bf16 %v993_v13, %v991_v6  ;;  %v290_v2 = vld [vmem:[#allocation5 + $0x3d8] sm:$0xff]  ;;  %v1011_v13 = vld [vmem:[#allocation7 + $0x600] sm:$0xff] }
  0xcc   :  { %2517 = vmatpush1.bf16.msra.mxu0 %v2516_v23  ;;  %1246 = vmatprep.mubr.f32.mxu0 %v810_v28  ;;  %v253_v23 = vld [vmem:[#allocation5 + $0x2b0] sm:$0xff]  ;;  %v980_v28 = vld [vmem:[#allocation7 + $0x508] sm:$0xff] }
  0xcd   :  { %2519 = vmatprep.subr.bf16.mxu0 %v2518_v27  ;;  %v258_v27 = vld [vmem:[#allocation5 + $0x2d8] sm:$0xff]  ;;  %2205 = vmatpush1.bf16.msra.mxu1 %v2204_v18  ;;  %v2208_v30 = vpack.c.bf16 %v253_v23, %v251_v22  ;;  %v2538_v36 = vpack.c.bf16 %v982_v29, %v980_v28  ;;  %v2226_v22 = vpack.c.bf16 %v274_v16, %v272_v15  ;;  %v271_v23 = vld [vmem:[#allocation5 + $0x340] sm:$0xff]  ;;  %v1000_v29 = vld [vmem:[#allocation7 + $0x5a8] sm:$0xff] }
  0xce   :  { %2207 = vmatprep.subr.bf16.mxu1 %v2206_v21  ;;  %v2210_v33 = vpack.c.bf16 %v258_v27, %v256_v26  ;;  %v998_v18 = vld [vmem:[#allocation7 + $0x598] sm:$0xff]  ;;  %v995_v21 = vld [vmem:[#allocation7 + $0x580] sm:$0xff]  ;;  %v997_v26 = vld [vmem:[#allocation7 + $0x590] sm:$0xff] }
  0xcf   :  { %1247 = vmatmul.mubr.f32.gmra.mrb[8].mxu0 %v809_v40  ;;  %v984_v40 = vld [vmem:[#allocation7 + $0x528] sm:$0xff]  ;;  %v2554_v25 = vpack.c.bf16 %v998_v18, %v996_v17  ;;  %v278_v28 = vld [vmem:[#allocation5 + $0x378] sm:$0xff]  ;;  %v1013_v15 = vld [vmem:[#allocation7 + $0x610] sm:$0xff] }
  0xd0   :  { %2521 = vmatpush1.bf16.msra.mxu0 %v2520_v37  ;;  %1317 = vmatprep.mubr.f32.mxu0 %v788_v42  ;;  %v981_v37 = vld [vmem:[#allocation7 + $0x510] sm:$0xff]  ;;  %v2212_v42 = vpack.c.bf16 %v257_v35, %v255_v34  ;;  %v276_v27 = vld [vmem:[#allocation5 + $0x368] sm:$0xff]  ;;  %v275_v35 = vld [vmem:[#allocation5 + $0x360] sm:$0xff] }
  0xd1   :  { %2523 = vmatprep.subr.bf16.mxu0 %v2522_v41  ;;  %v986_v41 = vld [vmem:[#allocation7 + $0x538] sm:$0xff]  ;;  %2209 = vmatpush1.bf16.msra.mxu1 %v2208_v30  ;;  %v2540_v43 = vpack.c.bf16 %v981_v37, %v979_v32  ;;  %v2556_v32 = vpack.c.bf16 %v997_v26, %v995_v21  ;;  %v2230_v34 = vpack.c.bf16 %v278_v28, %v276_v27  ;;  %v288_v0 = vld [vmem:[#allocation5 + $0x3c8] sm:$0xff]  ;;  %v1017_v27 = vld [vmem:[#allocation7 + $0x630] sm:$0xff] }
  0xd2   :  { %2211 = vmatprep.subr.bf16.mxu1 %v2210_v33  ;;  %v2542_v48 = vpack.c.bf16 %v986_v41, %v984_v40  ;;  %v1002_v30 = vld [vmem:[#allocation7 + $0x5b8] sm:$0xff]  ;;  %v999_v33 = vld [vmem:[#allocation7 + $0x5a0] sm:$0xff]  ;;  %v1004_v41 = vld [vmem:[#allocation7 + $0x5c8] sm:$0xff] }
  0xd3   :  { %v2558_v37 = vpack.c.bf16 %v1002_v30, %v1000_v29  ;;  %v282_v40 = vld [vmem:[#allocation5 + $0x398] sm:$0xff]  ;;  %v2560_v44 = vpack.c.bf16 %v1001_v38, %v999_v33  ;;  %v1012_v3 = vld [vmem:[#allocation7 + $0x608] sm:$0xff]  ;;  %v795_v38 = vld [vmem:[#allocation2 + $0x60] sm:$0xff] }
  0xd4   :  { %2525 = vmatpush1.bf16.msra.mxu0 %v2524_v53  ;;  %v990_v53 = vld [vmem:[#allocation7 + $0x558] sm:$0xff]  ;;  %v2234_v46 = vpack.c.bf16 %v282_v40, %v280_v39  ;;  %v1016_v16 = vld [vmem:[#allocation7 + $0x628] sm:$0xff]  ;;  %v295_v39 = vld [vmem:[#allocation5 + $0x400] sm:$0xff] }
  0xd5   :  { %2527 = vmatprep.subr.bf16.mxu0 %v2526_v59  ;;  %2213 = vmatpush1.bf16.msra.mxu1 %v2212_v42  ;;  %v263_v59 = vld [vmem:[#allocation5 + $0x300] sm:$0xff]  ;;  %v2546_v61 = vpack.c.bf16 %v990_v53, %v988_v52  ;;  %v1006_v42 = vld [vmem:[#allocation7 + $0x5d8] sm:$0xff]  ;;  %v1008_v53 = vld [vmem:[#allocation7 + $0x5e8] sm:$0xff] }
  0xd6   :  { %2215 = vmatprep.subr.bf16.mxu1 %v2214_v45  ;;  %v1003_v45 = vld [vmem:[#allocation7 + $0x5c0] sm:$0xff]  ;;  %v2562_v49 = vpack.c.bf16 %v1006_v42, %v1004_v41  ;;  %v286_v52 = vld [vmem:[#allocation5 + $0x3b8] sm:$0xff]  ;;  %v292_v18 = vld [vmem:[#allocation5 + $0x3e8] sm:$0xff] }
  0xd7   :  { %v2564_v57 = vpack.c.bf16 %v1005_v50, %v1003_v45  ;;  %v1018_v17 = vld [vmem:[#allocation7 + $0x638] sm:$0xff]  ;;  %v1020_v28 = vld [vmem:[#allocation7 + $0x648] sm:$0xff]  ;;  %v297_v40 = vld [vmem:[#allocation5 + $0x410] sm:$0xff]  ;;  %v447_v50 = vsub.s32 5, %v2978_v1 }
  0xd8   :  { %2529 = vmatpush1.bf16.msra.mxu0 %v2528_v4  ;;  %v2220_v4 = vpack.c.bf16 %v265_v60, %v263_v59  ;;  %v2238_v59 = vpack.c.bf16 %v286_v52, %v284_v51  ;;  %v283_v60 = vld [vmem:[#allocation5 + $0x3a0] sm:$0xff]  ;;  %v2574_v26 = vpack.c.bf16 %v1018_v17, %v1016_v16  ;;  %v796_v29 = vld [vmem:[#allocation2 + $0x68] sm:$0xff]  ;;  %v298_v33 = vld [vmem:[#allocation5 + $0x418] sm:$0xff]  ;;  %v2252_v52 = vpack.c.bf16 %v297_v40, %v295_v39 }
  0xd9   :  { %2531 = vmatprep.subr.bf16.mxu0 %v2530_v10  ;;  %2217 = vmatpush1.bf16.msra.mxu1 %v2216_v54  ;;  %v269_v10 = vld [vmem:[#allocation5 + $0x330] sm:$0xff]  ;;  %v1010_v54 = vld [vmem:[#allocation7 + $0x5f8] sm:$0xff]  ;;  %v1023_v51 = vld [vmem:[#allocation7 + $0x660] sm:$0xff] }
  0xda   :  { %2219 = vmatprep.subr.bf16.mxu1 %v2218_v58  ;;  %v1007_v58 = vld [vmem:[#allocation7 + $0x5e0] sm:$0xff]  ;;  %v2566_v62 = vpack.c.bf16 %v1010_v54, %v1008_v53  ;;  %v1021_v42 = vld [vmem:[#allocation7 + $0x650] sm:$0xff]  ;;  %v308_v17 = vld [vmem:[#allocation5 + $0x468] sm:$0xff] }
  0xdb   :  { %v2568_v6 = vpack.c.bf16 %v1009_v63, %v1007_v58  ;;  %v803_v54 = vld [vmem:[#allocation2 + $0xa0] sm:$0xff]  ;;  %v1030_v63 = vld [vmem:[#allocation7 + $0x698] sm:$0xff]  ;;  %v1037_v40 = vld [vmem:[#allocation7 + $0x6d0] sm:$0xff] }
  0xdc   :  { %2533 = vmatpush1.bf16.msra.mxu0 %v2532_v19  ;;  %v2224_v19 = vpack.c.bf16 %v269_v10, %v267_v8  ;;  %v287_v8 = vld [vmem:[#allocation5 + $0x3c0] sm:$0xff]  ;;  %v289_v10 = vld [vmem:[#allocation5 + $0x3d0] sm:$0xff] }
  0xdd   :  { %2535 = vmatprep.subr.bf16.mxu0 %v2534_v24  ;;  %2221 = vmatpush1.bf16.msra.mxu1 %v2220_v4  ;;  %v273_v24 = vld [vmem:[#allocation5 + $0x350] sm:$0xff]  ;;  %v1014_v4 = vld [vmem:[#allocation7 + $0x618] sm:$0xff]  ;;  %v2244_v21 = vpack.c.bf16 %v289_v10, %v287_v8  ;;  %v811_v8 = vld [vmem:[#allocation2 + $0xe0] sm:$0xff] }
  0xde   :  { %2223 = vmatprep.subr.bf16.mxu1 %v2222_v7  ;;  %v2242_v7 = vpack.c.bf16 %v290_v2, %v288_v0  ;;  %v304_v0 = vld [vmem:[#allocation5 + $0x448] sm:$0xff]  ;;  %v306_v2 = vld [vmem:[#allocation5 + $0x458] sm:$0xff]  ;;  %v303_v10 = vld [vmem:[#allocation5 + $0x440] sm:$0xff] }
  0xdf   :  { %v2258_v16 = vpack.c.bf16 %v306_v2, %v304_v0  ;;  %v319_v2 = vld [vmem:[#allocation5 + $0x4c0] sm:$0xff] }
  0xe0   :  { %2537 = vmatpush1.bf16.msra.mxu0 %v2536_v31  ;;  %v2228_v31 = vpack.c.bf16 %v273_v24, %v271_v23  ;;  %v1015_v23 = vld [vmem:[#allocation7 + $0x620] sm:$0xff] }
  0xe1   :  { %2539 = vmatprep.subr.bf16.mxu0 %v2538_v36  ;;  %2225 = vmatpush1.bf16.msra.mxu1 %v2224_v19  ;;  %v277_v36 = vld [vmem:[#allocation5 + $0x370] sm:$0xff]  ;;  %v294_v19 = vld [vmem:[#allocation5 + $0x3f8] sm:$0xff]  ;;  %v291_v24 = vld [vmem:[#allocation5 + $0x3e0] sm:$0xff] }
  0xe2   :  { %2227 = vmatprep.subr.bf16.mxu1 %v2226_v22  ;;  %v2572_v22 = vpack.c.bf16 %v1013_v15, %v1011_v13  ;;  %v2246_v30 = vpack.c.bf16 %v294_v19, %v292_v18  ;;  %v790_v15 = vld [vmem:[#allocation2 + $0x38] sm:$0xff]  ;;  %v1032_v19 = vld [vmem:[#allocation7 + $0x6a8] sm:$0xff] }
  0xe3   :  { %v310_v18 = vld [vmem:[#allocation5 + $0x478] sm:$0xff] }
  0xe4   :  { %2541 = vmatpush1.bf16.msra.mxu0 %v2540_v43  ;;  %v2232_v43 = vpack.c.bf16 %v277_v36, %v275_v35  ;;  %v1019_v35 = vld [vmem:[#allocation7 + $0x640] sm:$0xff] }
  0xe5   :  { %2543 = vmatprep.subr.bf16.mxu0 %v2542_v48  ;;  %2229 = vmatpush1.bf16.msra.mxu1 %v2228_v31  ;;  %v281_v48 = vld [vmem:[#allocation5 + $0x390] sm:$0xff]  ;;  %v1022_v31 = vld [vmem:[#allocation7 + $0x658] sm:$0xff]  ;;  %v2580_v53 = vpack.c.bf16 %v1021_v42, %v1019_v35  ;;  %v1035_v35 = vld [vmem:[#allocation7 + $0x6c0] sm:$0xff] }
  0xe6   :  { %2231 = vmatprep.subr.bf16.mxu1 %v2230_v34  ;;  %v435_v34 = vsub.s32 2, %v2978_v1  ;;  %v2578_v41 = vpack.c.bf16 %v1022_v31, %v1020_v28  ;;  %v312_v28 = vld [vmem:[#allocation5 + $0x488] sm:$0xff]  ;;  %v1038_v31 = vld [vmem:[#allocation7 + $0x6d8] sm:$0xff] }
  0xe7   :  { %v318_v42 = vld [vmem:[#allocation5 + $0x4b8] sm:$0xff] }
  0xe8   :  { %2545 = vmatpush1.bf16.msra.mxu0 %v2544_v55  ;;  %v2236_v55 = vpack.c.bf16 %v281_v48, %v279_v47  ;;  %v436_v47 = vrot.slane %v2984_v11, %v435_v34  ;;  %v300_v48 = vld [vmem:[#allocation5 + $0x428] sm:$0xff] }
  0xe9   :  { %2547 = vmatprep.subr.bf16.mxu0 %v2546_v61  ;;  %2233 = vmatpush1.bf16.msra.mxu1 %v2232_v43  ;;  %v285_v61 = vld [vmem:[#allocation5 + $0x3b0] sm:$0xff]  ;;  %v1024_v43 = vld [vmem:[#allocation7 + $0x668] sm:$0xff] }
  0xea   :  { %2235 = vmatprep.subr.bf16.mxu1 %v2234_v46  ;;  %v1026_v46 = vld [vmem:[#allocation7 + $0x678] sm:$0xff] }
  0xeb   :  { %v2582_v58 = vpack.c.bf16 %v1026_v46, %v1024_v43 }
  0xec   :  { %2549 = vmatpush1.bf16.msra.mxu0 %v2548_v5  ;;  %v2240_v5 = vpack.c.bf16 %v285_v61, %v283_v60  ;;  %v1028_v60 = vld [vmem:[#allocation7 + $0x688] sm:$0xff] }
  0xed   :  { %2551 = vmatprep.subr.bf16.mxu0 %v2550_v12  ;;  %2237 = vmatpush1.bf16.msra.mxu1 %v2236_v55  ;;  %v2570_v12 = vpack.c.bf16 %v1014_v4, %v1012_v3  ;;  %v299_v55 = vld [vmem:[#allocation5 + $0x420] sm:$0xff]  ;;  %v812_v61 = vld [vmem:[#allocation2 + $0xe8] sm:$0xff]  ;;  %v448_v3 = vrot.slane %v2984_v11, %v447_v50  ;;  %v2586_v13 = vpack.c.bf16 %v1030_v63, %v1028_v60  ;;  %v1034_v11 = vld [vmem:[#allocation7 + $0x6b8] sm:$0xff] }
  0xee   :  { %2239 = vmatprep.subr.bf16.mxu1 %v2238_v59  ;;  %v1025_v59 = vld [vmem:[#allocation7 + $0x670] sm:$0xff]  ;;  %v1027_v4 = vld [vmem:[#allocation7 + $0x680] sm:$0xff]  ;;  %v1046_v60 = vld [vmem:[#allocation7 + $0x718] sm:$0xff] }
  0xef   :  { %v1039_v50 = vld [vmem:[#allocation7 + $0x6e0] sm:$0xff] }
  0xf0   :  { %2553 = vmatpush1.bf16.msra.mxu0 %v2552_v20  ;;  %v787_v20 = vld [vmem:[#allocation2 + $0x20] sm:$0xff] }
  0xf1   :  { %2555 = vmatprep.subr.bf16.mxu0 %v2554_v25  ;;  %2241 = vmatpush1.bf16.msra.mxu1 %v2240_v5  ;;  %v293_v25 = vld [vmem:[#allocation5 + $0x3f0] sm:$0xff]  ;;  %v1043_v63 = vld [vmem:[#allocation7 + $0x700] sm:$0xff] }
  0xf2   :  { %2243 = vmatprep.subr.bf16.mxu1 %v2242_v7  ;;  %v2248_v36 = vpack.c.bf16 %v293_v25, %v291_v24  ;;  %v1029_v5 = vld [vmem:[#allocation7 + $0x690] sm:$0xff]  ;;  %v2584_v7 = vpack.c.bf16 %v1025_v59, %v1023_v51  ;;  %v307_v24 = vld [vmem:[#allocation5 + $0x460] sm:$0xff]  ;;  %v1044_v59 = vld [vmem:[#allocation7 + $0x708] sm:$0xff] }
  0xf3   :  { %v309_v25 = vld [vmem:[#allocation5 + $0x470] sm:$0xff] }
  0xf4   :  { %2557 = vmatpush1.bf16.msra.mxu0 %v2556_v32  ;;  %v296_v32 = vld [vmem:[#allocation5 + $0x408] sm:$0xff] }
  0xf5   :  { %2559 = vmatprep.subr.bf16.mxu0 %v2558_v37  ;;  %2245 = vmatpush1.bf16.msra.mxu1 %v2244_v21  ;;  %v2576_v37 = vpack.c.bf16 %v1017_v27, %v1015_v23  ;;  %v2250_v45 = vpack.c.bf16 %v298_v33, %v296_v32  ;;  %v2588_v21 = vpack.c.bf16 %v1029_v5, %v1027_v4  ;;  %v1033_v27 = vld [vmem:[#allocation7 + $0x6b0] sm:$0xff]  ;;  %v89_v32 = vld [vmem:[%s3124_s8] sm:$0x1] }
  0xf6   :  { %2247 = vmatprep.subr.bf16.mxu1 %v2246_v30  ;;  %v2262_v23 = vpack.c.bf16 %v310_v18, %v308_v17  ;;  %v1036_v30 = vld [vmem:[#allocation7 + $0x6c8] sm:$0xff]  ;;  %v2264_v33 = vpack.c.bf16 %v309_v25, %v307_v24  ;;  %v2602_v4 = vpack.c.bf16 %v1046_v60, %v1044_v59  ;;  %v1045_v5 = vld [vmem:[#allocation7 + $0x710] sm:$0xff]  ;;  %v323_v17 = vld [vmem:[#allocation5 + $0x4e0] sm:$0xff] }
  0xf7   :  { %v2594_v39 = vpack.c.bf16 %v1038_v31, %v1036_v30  ;;  %v325_v18 = vld [vmem:[#allocation5 + $0x4f0] sm:$0xff]  ;;  %v1064_v59 = vld [vmem:[#allocation7 + $0x7a8] sm:$0xff]  ;;  %v1066_v60 = vld [vmem:[#allocation7 + $0x7b8] sm:$0xff] }
  0xf8   :  { %2561 = vmatpush1.bf16.msra.mxu0 %v2560_v44  ;;  %v804_v44 = vld [vmem:[#allocation2 + $0xa8] sm:$0xff]  ;;  %v2280_v24 = vpack.c.bf16 %v325_v18, %v323_v17  ;;  %v1053_v31 = vld [vmem:[#allocation7 + $0x750] sm:$0xff]  ;;  %v343_v17 = vld [vmem:[#allocation5 + $0x580] sm:$0xff] }
  0xf9   :  { %2563 = vmatprep.subr.bf16.mxu0 %v2562_v49  ;;  %v302_v49 = vld [vmem:[#allocation5 + $0x438] sm:$0xff]  ;;  %2249 = vmatpush1.bf16.msra.mxu1 %v2248_v36  ;;  %v345_v18 = vld [vmem:[#allocation5 + $0x590] sm:$0xff] }
  0xfa   :  { %2251 = vmatprep.subr.bf16.mxu1 %v2250_v45  ;;  %v1042_v45 = vld [vmem:[#allocation7 + $0x6f8] sm:$0xff] }
  0xfc   :  { %2565 = vmatpush1.bf16.msra.mxu0 %v2564_v57  ;;  %v301_v57 = vld [vmem:[#allocation5 + $0x430] sm:$0xff]  ;;  %612 = vmatmul.mubr.f32.vlgmr.msra.gmra.mrb[0].mxu1 %v436_v47 }
  0xfd   :  { %2567 = vmatprep.subr.bf16.mxu0 %v2566_v62  ;;  %v2254_v62 = vpack.c.bf16 %v302_v49, %v300_v48  ;;  %2253 = vmatpush1.bf16.msra.mxu1 %v2252_v52  ;;  %v2596_v49 = vpack.c.bf16 %v1037_v40, %v1035_v35  ;;  %v315_v52 = vld [vmem:[#allocation5 + $0x4a0] sm:$0xff]  ;;  %v1058_v35 = vld [vmem:[#allocation7 + $0x778] sm:$0xff] }
  0xfe   :  { %682 = vmatprep.mubr.f32.mxu1 %v448_v3  ;;  %v321_v3 = vld [vmem:[#allocation5 + $0x4d0] sm:$0xff]  ;;  %v331_v40 = vld [vmem:[#allocation5 + $0x520] sm:$0xff] }
  0xff   :  { %2255 = vmatprep.subr.bf16.mxu1 %v2254_v62 }
 0x100   :  { %2569 = vmatpush1.bf16.msra.mxu0 %v2568_v6  ;;  %v2256_v6 = vpack.c.bf16 %v301_v57, %v299_v55  ;;  %v1041_v55 = vld [vmem:[#allocation7 + $0x6f0] sm:$0xff]  ;;  %v320_v57 = vld [vmem:[#allocation5 + $0x4c8] sm:$0xff] }
 0x101   :  { %2571 = vmatprep.subr.bf16.mxu0 %v2570_v12  ;;  %v305_v12 = vld [vmem:[#allocation5 + $0x450] sm:$0xff]  ;;  %v2600_v62 = vpack.c.bf16 %v1041_v55, %v1039_v50  ;;  %v1059_v50 = vld [vmem:[#allocation7 + $0x780] sm:$0xff] }
 0x102   :  { %2257 = vmatpush1.bf16.msra.mxu1 %v2256_v6  ;;  %v324_v6 = vld [vmem:[#allocation5 + $0x4e8] sm:$0xff]  ;;  %v1061_v55 = vld [vmem:[#allocation7 + $0x790] sm:$0xff] }
 0x103   :  { %1318 = vmatmul.mubr.f32.vlgmr.msra.gmra.mrb[2].mxu0 %v787_v20  ;;  %v2260_v20 = vpack.c.bf16 %v305_v12, %v303_v10  ;;  %2259 = vmatprep.subr.bf16.mxu1 %v2258_v16  ;;  %v1050_v10 = vld [vmem:[#allocation7 + $0x738] sm:$0xff]  ;;  %v2276_v12 = vpack.c.bf16 %v321_v3, %v319_v2  ;;  %v339_v2 = vld [vmem:[#allocation5 + $0x560] sm:$0xff]  ;;  %v341_v3 = vld [vmem:[#allocation5 + $0x570] sm:$0xff] }
 0x104   :  { %2573 = vmatpush1.bf16.msra.mxu0 %v2572_v22  ;;  %1323 = vmatprep.mubr.f32.mxu0 %v796_v29  ;;  %v1031_v22 = vld [vmem:[#allocation7 + $0x6a0] sm:$0xff]  ;;  %v314_v29 = vld [vmem:[#allocation5 + $0x498] sm:$0xff] }
 0x105   :  { %2575 = vmatprep.subr.bf16.mxu0 %v2574_v26  ;;  %v2590_v26 = vpack.c.bf16 %v1034_v11, %v1032_v19  ;;  %v2592_v34 = vpack.c.bf16 %v1033_v27, %v1031_v22  ;;  %v2266_v36 = vpack.c.bf16 %v314_v29, %v312_v28  ;;  %v1049_v11 = vld [vmem:[#allocation7 + $0x730] sm:$0xff]  ;;  %v1052_v22 = vld [vmem:[#allocation7 + $0x748] sm:$0xff]  ;;  %v327_v28 = vld [vmem:[#allocation5 + $0x500] sm:$0xff] }
 0x106   :  { %2261 = vmatpush1.bf16.msra.mxu1 %v2260_v20  ;;  %v328_v20 = vld [vmem:[#allocation5 + $0x508] sm:$0xff]  ;;  %v329_v29 = vld [vmem:[#allocation5 + $0x510] sm:$0xff] }
 0x107   :  { %1324 = vmatmul.mubr.f32.gmra.mrb[4].mxu0 %v795_v38  ;;  %2263 = vmatprep.subr.bf16.mxu1 %v2262_v23  ;;  %v313_v38 = vld [vmem:[#allocation5 + $0x490] sm:$0xff]  ;;  %v1054_v23 = vld [vmem:[#allocation7 + $0x758] sm:$0xff] }
 0x108   :  { %2577 = vmatpush1.bf16.msra.mxu0 %v2576_v37  ;;  %1329 = vmatprep.mubr.f32.mxu0 %v804_v44  ;;  %v311_v37 = vld [vmem:[#allocation5 + $0x480] sm:$0xff]  ;;  %v1040_v44 = vld [vmem:[#allocation7 + $0x6e8] sm:$0xff]  ;;  %v2610_v30 = vpack.c.bf16 %v1054_v23, %v1052_v22  ;;  %v1074_v23 = vld [vmem:[#allocation7 + $0x7f8] sm:$0xff] }
 0x109   :  { %2579 = vmatprep.subr.bf16.mxu0 %v2578_v41  ;;  %v316_v41 = vld [vmem:[#allocation5 + $0x4a8] sm:$0xff]  ;;  %v2268_v48 = vpack.c.bf16 %v313_v38, %v311_v37  ;;  %v1055_v38 = vld [vmem:[#allocation7 + $0x760] sm:$0xff] }
 0x10a   :  { %2265 = vmatpush1.bf16.msra.mxu1 %v2264_v33  ;;  %v2270_v51 = vpack.c.bf16 %v318_v42, %v316_v41  ;;  %v334_v33 = vld [vmem:[#allocation5 + $0x538] sm:$0xff]  ;;  %v333_v41 = vld [vmem:[#allocation5 + $0x530] sm:$0xff]  ;;  %v1072_v22 = vld [vmem:[#allocation7 + $0x7e8] sm:$0xff] }
 0x10b   :  { %1330 = vmatmul.mubr.f32.gmra.mrb[6].mxu0 %v803_v54  ;;  %2267 = vmatprep.subr.bf16.mxu1 %v2266_v36  ;;  %v2598_v54 = vpack.c.bf16 %v1042_v45, %v1040_v44  ;;  %v2284_v36 = vpack.c.bf16 %v329_v29, %v327_v28  ;;  %v336_v44 = vld [vmem:[#allocation5 + $0x548] sm:$0xff]  ;;  %v338_v45 = vld [vmem:[#allocation5 + $0x558] sm:$0xff]  ;;  %v347_v28 = vld [vmem:[#allocation5 + $0x5a0] sm:$0xff] }
 0x10c   :  { %2581 = vmatpush1.bf16.msra.mxu0 %v2580_v53  ;;  %1335 = vmatprep.mubr.f32.mxu0 %v812_v61  ;;  %v317_v53 = vld [vmem:[#allocation5 + $0x4b0] sm:$0xff] }
 0x10d   :  { %2583 = vmatprep.subr.bf16.mxu0 %v2582_v58  ;;  %v322_v58 = vld [vmem:[#allocation5 + $0x4d8] sm:$0xff]  ;;  %v2272_v61 = vpack.c.bf16 %v317_v53, %v315_v52  ;;  %v335_v52 = vld [vmem:[#allocation5 + $0x540] sm:$0xff]  ;;  %v337_v53 = vld [vmem:[#allocation5 + $0x550] sm:$0xff] }
 0x10e   :  { %2269 = vmatpush1.bf16.msra.mxu1 %v2268_v48  ;;  %v2274_v0 = vpack.c.bf16 %v322_v58, %v320_v57  ;;  %v2288_v48 = vpack.c.bf16 %v333_v41, %v331_v40  ;;  %v340_v57 = vld [vmem:[#allocation5 + $0x568] sm:$0xff]  ;;  %v342_v58 = vld [vmem:[#allocation5 + $0x578] sm:$0xff]  ;;  %v349_v29 = vld [vmem:[#allocation5 + $0x5b0] sm:$0xff] }
 0x10f   :  { %1336 = vmatmul.mubr.f32.gmra.mrb[8].mxu0 %v811_v8  ;;  %2271 = vmatprep.subr.bf16.mxu1 %v2270_v51  ;;  %v1048_v8 = vld [vmem:[#allocation7 + $0x728] sm:$0xff]  ;;  %v2290_v51 = vpack.c.bf16 %v338_v45, %v336_v44  ;;  %v358_v40 = vld [vmem:[#allocation5 + $0x5f8] sm:$0xff]  ;;  %v355_v44 = vld [vmem:[#allocation5 + $0x5e0] sm:$0xff] }
 0x110   :  { %2585 = vmatpush1.bf16.msra.mxu0 %v2584_v7  ;;  %1406 = vmatprep.mubr.f32.mxu0 %v790_v15  ;;  %v326_v7 = vld [vmem:[#allocation5 + $0x4f8] sm:$0xff]  ;;  %v1047_v15 = vld [vmem:[#allocation7 + $0x720] sm:$0xff]  ;;  %v2606_v19 = vpack.c.bf16 %v1050_v10, %v1048_v8  ;;  %v1068_v8 = vld [vmem:[#allocation7 + $0x7c8] sm:$0xff] }
 0x111   :  { %2587 = vmatprep.subr.bf16.mxu0 %v2586_v13  ;;  %v2604_v13 = vpack.c.bf16 %v1045_v5, %v1043_v63  ;;  %v2278_v16 = vpack.c.bf16 %v326_v7, %v324_v6  ;;  %v2608_v25 = vpack.c.bf16 %v1049_v11, %v1047_v15  ;;  %v1063_v63 = vld [vmem:[#allocation7 + $0x7a0] sm:$0xff]  ;;  %v1065_v5 = vld [vmem:[#allocation7 + $0x7b0] sm:$0xff]  ;;  %v344_v6 = vld [vmem:[#allocation5 + $0x588] sm:$0xff] }
 0x112   :  { %2273 = vmatpush1.bf16.msra.mxu1 %v2272_v61  ;;  %v2292_v61 = vpack.c.bf16 %v337_v53, %v335_v52  ;;  %v346_v7 = vld [vmem:[#allocation5 + $0x598] sm:$0xff]  ;;  %v1067_v15 = vld [vmem:[#allocation7 + $0x7c0] sm:$0xff]  ;;  %v1069_v11 = vld [vmem:[#allocation7 + $0x7d0] sm:$0xff] }
 0x113   :  { %2275 = vmatprep.subr.bf16.mxu1 %v2274_v0  ;;  %v2294_v0 = vpack.c.bf16 %v342_v58, %v340_v57  ;;  %v1070_v10 = vld [vmem:[#allocation7 + $0x7d8] sm:$0xff]  ;;  %v357_v45 = vld [vmem:[#allocation5 + $0x5f0] sm:$0xff]  ;;  %v359_v53 = vld [vmem:[#allocation5 + $0x600] sm:$0xff] }
 0x114   :  { %2589 = vmatpush1.bf16.msra.mxu0 %v2588_v21  ;;  %v330_v21 = vld [vmem:[#allocation5 + $0x518] sm:$0xff]  ;;  %v364_v57 = vld [vmem:[#allocation5 + $0x628] sm:$0xff] }
 0x115   :  { %2591 = vmatprep.subr.bf16.mxu0 %v2590_v26  ;;  %v1051_v26 = vld [vmem:[#allocation7 + $0x740] sm:$0xff]  ;;  %v2282_v27 = vpack.c.bf16 %v330_v21, %v328_v20  ;;  %v348_v20 = vld [vmem:[#allocation5 + $0x5a8] sm:$0xff]  ;;  %v350_v21 = vld [vmem:[#allocation5 + $0x5b8] sm:$0xff] }
 0x116   :  { %v160_v43 = vpop.f32.mrb[0].mxu0  ;;  %2277 = vmatpush1.bf16.msra.mxu1 %v2276_v12  ;;  %v2612_v37 = vpack.c.bf16 %v1053_v31, %v1051_v26  ;;  %v2296_v12 = vpack.c.bf16 %v341_v3, %v339_v2  ;;  %v1071_v26 = vld [vmem:[#allocation7 + $0x7e0] sm:$0xff]  ;;  %v1073_v31 = vld [vmem:[#allocation7 + $0x7f0] sm:$0xff]  ;;  %v366_v58 = vld [vmem:[#allocation5 + $0x638] sm:$0xff] }
 0x117   :  { %v161_v46 = vadd.f32 %v160_v43, %v89_v32  ;;  %v2059_v47 = vpop.f32.mrb[1].mxu0  ;;  %2279 = vmatprep.subr.bf16.mxu1 %v2278_v16  ;;  %v332_v32 = vld [vmem:[#allocation5 + $0x528] sm:$0xff]  ;;  %v1057_v43 = vld [vmem:[#allocation7 + $0x770] sm:$0xff]  ;;  %v2298_v16 = vpack.c.bf16 %v346_v7, %v344_v6  ;;  %v363_v2 = vld [vmem:[#allocation5 + $0x620] sm:$0xff] }
 0x118   :  { %2593 = vmatpush1.bf16.msra.mxu0 %v2592_v34  ;;  %v1056_v34 = vld [vmem:[#allocation7 + $0x768] sm:$0xff]  ;;  %v1062_v47 = vld [vmem:[#allocation7 + $0x798] sm:$0xff]  ;;  %v365_v3 = vld [vmem:[#allocation5 + $0x630] sm:$0xff] }
 0x119   :  { %2595 = vmatprep.subr.bf16.mxu0 %v2594_v39  ;;  %165 = vst.msk [vmem:[#allocation8] sm:$0x1] %vm164_vm2, %v161_v46  ;;  %v2286_v39 = vpack.c.bf16 %v334_v33, %v332_v32  ;;  %v2614_v42 = vpack.c.bf16 %v1058_v35, %v1056_v34  ;;  %v1060_v46 = vld [vmem:[#allocation7 + $0x788] sm:$0xff]  ;;  %v354_v33 = vld [vmem:[#allocation5 + $0x5d8] sm:$0xff]  ;;  %v2304_v34 = vpack.c.bf16 %v349_v29, %v347_v28 }
 0x11a   :  { %2281 = vmatpush1.bf16.msra.mxu1 %v2280_v24  ;;  %v2300_v24 = vpack.c.bf16 %v345_v18, %v343_v17  ;;  %v352_v32 = vld [vmem:[#allocation5 + $0x5c8] sm:$0xff]  ;;  %v2632_v35 = vpack.c.bf16 %v1073_v31, %v1071_v26  ;;  %v370_v6 = vld [vmem:[#allocation5 + $0x658] sm:$0xff]  ;;  %v377_v26 = vld [vmem:[#allocation5 + $0x690] sm:$0xff] }
 0x11b   :  { %2283 = vmatprep.subr.bf16.mxu1 %v2282_v27  ;;  %v2302_v27 = vpack.c.bf16 %v350_v21, %v348_v20  ;;  %v374_v17 = vld [vmem:[#allocation5 + $0x678] sm:$0xff]  ;;  %v373_v20 = vld [vmem:[#allocation5 + $0x670] sm:$0xff]  ;;  %v376_v21 = vld [vmem:[#allocation5 + $0x688] sm:$0xff] }
 0x11c   :  { %2597 = vmatpush1.bf16.msra.mxu0 %v2596_v49  ;;  %v2616_v49 = vpack.c.bf16 %v1057_v43, %v1055_v38  ;;  %v353_v38 = vld [vmem:[#allocation5 + $0x5d0] sm:$0xff]  ;;  %v382_v28 = vld [vmem:[#allocation5 + $0x6b8] sm:$0xff]  ;;  %v379_v31 = vld [vmem:[#allocation5 + $0x6a0] sm:$0xff] }
 0x11d   :  { %2599 = vmatprep.subr.bf16.mxu0 %v2598_v54  ;;  %v2618_v54 = vpack.c.bf16 %v1062_v47, %v1060_v46  ;;  %v798_v46 = vld [vmem:[#allocation2 + $0x78] sm:$0xff]  ;;  %v360_v47 = vld [vmem:[#allocation5 + $0x608] sm:$0xff] }
 0x11e   :  { %2285 = vmatpush1.bf16.msra.mxu1 %v2284_v36  ;;  %v2306_v36 = vpack.c.bf16 %v354_v33, %v352_v32  ;;  %v381_v32 = vld [vmem:[#allocation5 + $0x6b0] sm:$0xff]  ;;  %v384_v33 = vld [vmem:[#allocation5 + $0x6c8] sm:$0xff] }
 0x11f   :  { %2287 = vmatprep.subr.bf16.mxu1 %v2286_v39  ;;  %v356_v39 = vld [vmem:[#allocation5 + $0x5e8] sm:$0xff] }
 0x120   :  { %2601 = vmatpush1.bf16.msra.mxu0 %v2600_v62  ;;  %v2620_v62 = vpack.c.bf16 %v1061_v55, %v1059_v50  ;;  %v2310_v43 = vpack.c.bf16 %v358_v40, %v356_v39  ;;  %v2312_v50 = vpack.c.bf16 %v357_v45, %v355_v44  ;;  %v806_v55 = vld [vmem:[#allocation2 + $0xb8] sm:$0xff]  ;;  %v388_v39 = vld [vmem:[#allocation5 + $0x6e8] sm:$0xff]  ;;  %v389_v44 = vld [vmem:[#allocation5 + $0x6f0] sm:$0xff] }
 0x121   :  { %2603 = vmatprep.subr.bf16.mxu0 %v2602_v4  ;;  %v2622_v4 = vpack.c.bf16 %v1066_v60, %v1064_v59  ;;  %v455_v59 = vsub.s32 7, %v2978_v1  ;;  %v3008_v60 = vld [vmem:[%s3117_s1] sm:$0xff]  ;;  %v390_v40 = vld [vmem:[#allocation5 + $0x6f8] sm:$0xff]  ;;  %v392_v45 = vld [vmem:[#allocation5 + $0x708] sm:$0xff] }
 0x122   :  { %2289 = vmatpush1.bf16.msra.mxu1 %v2288_v48  ;;  %v362_v48 = vld [vmem:[#allocation5 + $0x618] sm:$0xff] }
 0x123   :  { %2291 = vmatprep.subr.bf16.mxu1 %v2290_v51  ;;  %v797_v51 = vld [vmem:[#allocation2 + $0x70] sm:$0xff]  ;;  %v2314_v52 = vpack.c.bf16 %v362_v48, %v360_v47  ;;  %v456_v7 = vrot.slane %v3008_v60, %v455_v59  ;;  %v402_v59 = vld [vmem:[#allocation5 + $0x758] sm:$0xff] }
 0x124   :  { %2605 = vmatpush1.bf16.msra.mxu0 %v2604_v13  ;;  %v2624_v13 = vpack.c.bf16 %v1065_v5, %v1063_v63  ;;  %v805_v63 = vld [vmem:[#allocation2 + $0xb0] sm:$0xff]  ;;  %v368_v5 = vld [vmem:[#allocation5 + $0x648] sm:$0xff] }
 0x125   :  { %2607 = vmatprep.subr.bf16.mxu0 %v2606_v19  ;;  %v2626_v19 = vpack.c.bf16 %v1070_v10, %v1068_v8  ;;  %v2320_v8 = vpack.c.bf16 %v365_v3, %v363_v2  ;;  %v813_v10 = vld [vmem:[#allocation2 + $0xf0] sm:$0xff]  ;;  %v404_v2 = vld [vmem:[#allocation5 + $0x768] sm:$0xff]  ;;  %v406_v3 = vld [vmem:[#allocation5 + $0x778] sm:$0xff] }
 0x126   :  { %2293 = vmatpush1.bf16.msra.mxu1 %v2292_v61 }
 0x127   :  { %2295 = vmatprep.subr.bf16.mxu1 %v2294_v0  ;;  %v2318_v0 = vpack.c.bf16 %v366_v58, %v364_v57  ;;  %v397_v57 = vld [vmem:[#allocation5 + $0x730] sm:$0xff]  ;;  %v400_v58 = vld [vmem:[#allocation5 + $0x748] sm:$0xff] }
 0x128   :  { %2609 = vmatpush1.bf16.msra.mxu0 %v2608_v25  ;;  %v2628_v25 = vpack.c.bf16 %v1069_v11, %v1067_v15  ;;  %v369_v15 = vld [vmem:[#allocation5 + $0x650] sm:$0xff]  ;;  %v371_v11 = vld [vmem:[#allocation5 + $0x660] sm:$0xff] }
 0x129   :  { %2611 = vmatprep.subr.bf16.mxu0 %v2610_v30  ;;  %v2630_v30 = vpack.c.bf16 %v1074_v23, %v1072_v22  ;;  %v378_v22 = vld [vmem:[#allocation5 + $0x698] sm:$0xff]  ;;  %v2328_v23 = vpack.c.bf16 %v373_v20, %v371_v11  ;;  %v411_v20 = vld [vmem:[#allocation5 + $0x7a0] sm:$0xff] }
 0x12a   :  { %2297 = vmatpush1.bf16.msra.mxu1 %v2296_v12  ;;  %v2322_v12 = vpack.c.bf16 %v370_v6, %v368_v5  ;;  %v2358_v5 = vpack.c.bf16 %v406_v3, %v404_v2  ;;  %v403_v6 = vld [vmem:[#allocation5 + $0x760] sm:$0xff] }
 0x12b   :  { %2299 = vmatprep.subr.bf16.mxu1 %v2298_v16  ;;  %v372_v16 = vld [vmem:[#allocation5 + $0x668] sm:$0xff] }
 0x12c   :  { %2613 = vmatpush1.bf16.msra.mxu0 %v2612_v37  ;;  %v351_v37 = vld [vmem:[#allocation5 + $0x5c0] sm:$0xff] }
 0x12d   :  { %2615 = vmatprep.subr.bf16.mxu0 %v2614_v42  ;;  %v2308_v41 = vpack.c.bf16 %v353_v38, %v351_v37  ;;  %v789_v42 = vld [vmem:[#allocation2 + $0x30] sm:$0xff]  ;;  %v383_v37 = vld [vmem:[#allocation5 + $0x6c0] sm:$0xff] }
 0x12e   :  { %2301 = vmatpush1.bf16.msra.mxu1 %v2300_v24  ;;  %v2330_v24 = vpack.c.bf16 %v378_v22, %v376_v21  ;;  %v385_v38 = vld [vmem:[#allocation5 + $0x6d0] sm:$0xff]  ;;  %v416_v22 = vld [vmem:[#allocation5 + $0x7c8] sm:$0xff] }
 0x12f   :  { %2303 = vmatprep.subr.bf16.mxu1 %v2302_v27  ;;  %v380_v27 = vld [vmem:[#allocation5 + $0x6a8] sm:$0xff]  ;;  %v413_v21 = vld [vmem:[#allocation5 + $0x7b0] sm:$0xff] }
 0x130   :  { %2617 = vmatpush1.bf16.msra.mxu0 %v2616_v49  ;;  %v443_v49 = vsub.s32 4, %v2978_v1 }
 0x131   :  { %2619 = vmatprep.subr.bf16.mxu0 %v2618_v54  ;;  %v361_v54 = vld [vmem:[#allocation5 + $0x610] sm:$0xff] }
 0x132   :  { %2305 = vmatpush1.bf16.msra.mxu1 %v2304_v34  ;;  %v444_v61 = vrot.slane %v3008_v60, %v443_v49  ;;  %v386_v34 = vld [vmem:[#allocation5 + $0x6d8] sm:$0xff]  ;;  %v391_v49 = vld [vmem:[#allocation5 + $0x700] sm:$0xff] }
 0x133   :  { %2307 = vmatprep.subr.bf16.mxu1 %v2306_v36  ;;  %v2338_v36 = vpack.c.bf16 %v386_v34, %v384_v33  ;;  %v421_v33 = vld [vmem:[#allocation5 + $0x7f0] sm:$0xff]  ;;  %v451_v34 = vsub.s32 6, %v2978_v1 }
 0x134   :  { %2621 = vmatpush1.bf16.msra.mxu0 %v2620_v62  ;;  %v2316_v62 = vpack.c.bf16 %v361_v54, %v359_v53 }
 0x135   :  { %2623 = vmatprep.subr.bf16.mxu0 %v2622_v4  ;;  %v814_v4 = vld [vmem:[#allocation2 + $0xf8] sm:$0xff] }
 0x136   :  { %2309 = vmatpush1.bf16.msra.mxu1 %v2308_v41  ;;  %v2340_v41 = vpack.c.bf16 %v385_v38, %v383_v37  ;;  %v815_v37 = vld [vmem:[%s3121_s5] sm:$0xff]  ;;  %v816_v38 = vld [vmem:[%s3121_s5 + $0x8] sm:$0xff] }
 0x137   :  { %2311 = vmatprep.subr.bf16.mxu1 %v2310_v43  ;;  %v387_v43 = vld [vmem:[#allocation5 + $0x6e0] sm:$0xff] }
 0x138   :  { %2625 = vmatpush1.bf16.msra.mxu0 %v2624_v13  ;;  %v367_v13 = vld [vmem:[#allocation5 + $0x640] sm:$0xff]  ;;  %v2344_v47 = vpack.c.bf16 %v389_v44, %v387_v43 }
 0x139   :  { %2627 = vmatprep.subr.bf16.mxu0 %v2626_v19  ;;  %v2324_v18 = vpack.c.bf16 %v369_v15, %v367_v13  ;;  %v2326_v19 = vpack.c.bf16 %v374_v17, %v372_v16  ;;  %v407_v15 = vld [vmem:[#allocation5 + $0x780] sm:$0xff]  ;;  %v409_v16 = vld [vmem:[#allocation5 + $0x790] sm:$0xff]  ;;  %v412_v17 = vld [vmem:[#allocation5 + $0x7a8] sm:$0xff] }
 0x13a   :  { %2313 = vmatpush1.bf16.msra.mxu1 %v2312_v50  ;;  %v393_v50 = vld [vmem:[#allocation5 + $0x710] sm:$0xff] }
 0x13b   :  { %2315 = vmatprep.subr.bf16.mxu1 %v2314_v52  ;;  %v398_v52 = vld [vmem:[#allocation5 + $0x738] sm:$0xff]  ;;  %v2348_v53 = vpack.c.bf16 %v393_v50, %v391_v49  ;;  %v423_v50 = vld [vmem:[%s3125_s9] sm:$0x3]  ;;  %s2845_s9 = smov [#allocation9]  }
 0x13c   :  { %2629 = vmatpush1.bf16.msra.mxu0 %v2628_v25  ;;  %v375_v25 = vld [vmem:[#allocation5 + $0x680] sm:$0xff]  ;;  %s1948_s29 = sshll.u32 %s2845_s9, 4  ;;  %s1949_s29 = int_to_ptr.vmem [resolvable:$true] %s1948_s29 }
 0x13d   :  { %2631 = vmatprep.subr.bf16.mxu0 %v2630_v30  ;;  %683 = vmatmul.mubr.f32.vlgmr.msra.gmra.mrb[0].mxu1 %v444_v61  ;;  %v2332_v29 = vpack.c.bf16 %v377_v26, %v375_v25  ;;  %v2334_v30 = vpack.c.bf16 %v382_v28, %v380_v27  ;;  %v415_v26 = vld [vmem:[#allocation5 + $0x7c0] sm:$0xff]  ;;  %v417_v27 = vld [vmem:[#allocation5 + $0x7d0] sm:$0xff]  ;;  %v420_v28 = vld [vmem:[#allocation5 + $0x7e8] sm:$0xff]  ;;  %s2760_s25 = scalar_lea.vmem %s1949_s29, 32  ;;  %p2765_p11 = scmp.lt.s32.totalorder %s1949_s29, %s1949_s29 }
 0x13e   :  { %2317 = vmatpush1.bf16.msra.mxu1 %v2316_v62  ;;  %753 = vmatprep.mubr.f32.mxu1 %v456_v7  ;;  %v2354_v62 = vpack.c.bf16 %v402_v59, %v400_v58  ;;  %v405_v7 = vld [vmem:[#allocation5 + $0x770] sm:$0xff]  ;;  %p2761_p10 = scmp.ne.s32.totalorder %s1949_s29, %s2760_s25  ;;  %p2766_p12 = scmp.lt.s32.totalorder %s2760_s25, %s2760_s25 }
 0x13f   :  { %2319 = vmatprep.subr.bf16.mxu1 %v2318_v0  ;;  %v401_v0 = vld [vmem:[#allocation5 + $0x750] sm:$0xff] }
 0x140   :  { %2633 = vmatpush1.bf16.msra.mxu0 %v2632_v35  ;;  %v2336_v35 = vpack.c.bf16 %v381_v32, %v379_v31  ;;  %v419_v32 = vld [vmem:[#allocation5 + $0x7e0] sm:$0xff]  ;;  %p2767_p13 = por %p2766_p12, %p2765_p11 }
 0x142   :  { %2321 = vmatpush1.bf16.msra.mxu1 %v2320_v8  ;;  %v408_v8 = vld [vmem:[#allocation5 + $0x788] sm:$0xff]  ;;  %p2768_p0 = pnand %p2767_p13, %p2761_p10 }
 0x143   :  { %1407 = vmatmul.mubr.f32.vlgmr.msra.gmra.mrb[2].mxu0 %v789_v42  ;;  %2323 = vmatprep.subr.bf16.mxu1 %v2322_v12  ;;  %v2342_v42 = vpack.c.bf16 %v390_v40, %v388_v39  ;;  %v2360_v12 = vpack.c.bf16 %v405_v7, %v403_v6  ;;  %v2634_v39 = vpack.c.bf16 %v816_v38, %v815_v37  ;;  %v817_v40 = vld [vmem:[%s3121_s5 + $0x10] sm:$0xff] }
 0x144   :  { %1412 = vmatprep.mubr.f32.mxu0 %v798_v46  ;;  %v394_v46 = vld [vmem:[#allocation5 + $0x718] sm:$0xff] }
 0x145   :  { %v2346_v48 = vpack.c.bf16 %v394_v46, %v392_v45  ;;  %2635 = vmatprep.subr.bf16.mxu0 %v2634_v39 }
 0x146   :  { %2325 = vmatpush1.bf16.msra.mxu1 %v2324_v18  ;;  %v414_v18 = vld [vmem:[#allocation5 + $0x7b8] sm:$0xff]  ;;  %2637 = vmatpush3.bf16.msra.mxu0 %v2634_v39 }
 0x147   :  { %1413 = vmatmul.mubr.f32.gmra.mrb[4].mxu0 %v797_v51  ;;  %2327 = vmatprep.subr.bf16.mxu1 %v2326_v19  ;;  %v396_v51 = vld [vmem:[#allocation5 + $0x728] sm:$0xff]  ;;  %v2364_v19 = vpack.c.bf16 %v409_v16, %v407_v15  ;;  %v2366_v11 = vpack.c.bf16 %v414_v18, %v412_v17 }
 0x148   :  { %1418 = vmatprep.mubr.f32.mxu0 %v806_v55  ;;  %v2350_v54 = vpack.c.bf16 %v398_v52, %v396_v51  ;;  %v395_v55 = vld [vmem:[#allocation5 + $0x720] sm:$0xff]  ;;  %v2844_v51 = vmov 1966171168  }
 0x149   :  { %v2352_v61 = vpack.c.bf16 %v397_v57, %v395_v55  ;;  %v764_v52 = vunpack.c.l.s4 %v2844_v51 }
 0x14a   :  { %2329 = vmatpush1.bf16.msra.mxu1 %v2328_v23  ;;  %v418_v23 = vld [vmem:[#allocation5 + $0x7d8] sm:$0xff] }
 0x14b   :  { %1419 = vmatmul.mubr.f32.gmra.mrb[6].mxu0 %v805_v63  ;;  %2331 = vmatprep.subr.bf16.mxu1 %v2330_v24  ;;  %v399_v63 = vld [vmem:[#allocation5 + $0x740] sm:$0xff]  ;;  %v2368_v24 = vpack.c.bf16 %v413_v21, %v411_v20  ;;  %v2370_v25 = vpack.c.bf16 %v418_v23, %v416_v22  ;;  %v765_v55 = vunpack.c.0.s8 %v764_v52 }
 0x14c   :  { %1424 = vmatprep.mubr.f32.mxu0 %v814_v4  ;;  %v2356_v4 = vpack.c.bf16 %v401_v0, %v399_v63 }
 0x14e   :  { %2333 = vmatpush1.bf16.msra.mxu1 %v2332_v29  ;;  %v422_v29 = vld [vmem:[#allocation5 + $0x7f8] sm:$0xff] }
 0x14f   :  { %1425 = vmatmul.mubr.f32.gmra.mrb[8].mxu0 %v813_v10  ;;  %2335 = vmatprep.subr.bf16.mxu1 %v2334_v30  ;;  %v410_v10 = vld [vmem:[#allocation5 + $0x798] sm:$0xff]  ;;  %v2372_v30 = vpack.c.bf16 %v417_v27, %v415_v26  ;;  %v2374_v31 = vpack.c.bf16 %v422_v29, %v420_v28 }
 0x150   :  { %v2362_v13 = vpack.c.bf16 %v410_v10, %v408_v8 }
 0x152   :  { %2337 = vmatpush1.bf16.msra.mxu1 %v2336_v35  ;;  %v2376_v35 = vpack.c.bf16 %v421_v33, %v419_v32 }
 0x153   :  { %2339 = vmatprep.subr.bf16.mxu1 %v2338_v36  ;;  %v452_v36 = vrot.slane %v3008_v60, %v451_v34  ;;  %v818_v60 = vld [vmem:[%s3121_s5 + $0x18] sm:$0xff] }
 0x156   :  { %2341 = vmatpush1.bf16.msra.mxu1 %v2340_v41 }
 0x157   :  { %2343 = vmatprep.subr.bf16.mxu1 %v2342_v42  ;;  %v2638_v42 = vpack.c.bf16 %v818_v60, %v817_v40 }
 0x159   :  { %2639 = vmatprep.subr.bf16.mxu0 %v2638_v42 }
 0x15a   :  { %2345 = vmatpush1.bf16.msra.mxu1 %v2344_v47  ;;  %2641 = vmatpush3.bf16.msra.mxu0 %v2638_v42 }
 0x15b   :  { %2347 = vmatprep.subr.bf16.mxu1 %v2346_v48 }
 0x15e   :  { %2349 = vmatpush1.bf16.msra.mxu1 %v2348_v53  ;;  %v469_v53 = vrot.slane %v423_v50, %v427_v14 }
 0x15f   :  { %2351 = vmatprep.subr.bf16.mxu1 %v2350_v54  ;;  %v473_v54 = vrot.slane %v423_v50, %v431_v9 }
 0x162   :  { %2353 = vmatpush1.bf16.msra.mxu1 %v2352_v61 }
 0x163   :  { %2355 = vmatprep.subr.bf16.mxu1 %v2354_v62  ;;  %v768_v62 = vsub.s32 %v765_v55, %v2978_v1 }
 0x166   :  { %2357 = vmatpush1.bf16.msra.mxu1 %v2356_v4 }
 0x167   :  { %2359 = vmatprep.subr.bf16.mxu1 %v2358_v5 }
 0x16a   :  { %2361 = vmatpush1.bf16.msra.mxu1 %v2360_v12 }
 0x16b   :  { %2363 = vmatprep.subr.bf16.mxu1 %v2362_v13 }
 0x16e   :  { %2365 = vmatpush1.bf16.msra.mxu1 %v2364_v19 }
 0x16f   :  { %2367 = vmatprep.subr.bf16.mxu1 %v2366_v11 }
 0x172   :  { %2369 = vmatpush1.bf16.msra.mxu1 %v2368_v24 }
 0x173   :  { %2371 = vmatprep.subr.bf16.mxu1 %v2370_v25 }
 0x176   :  { %2373 = vmatpush1.bf16.msra.mxu1 %v2372_v30 }
 0x177   :  { %2375 = vmatprep.subr.bf16.mxu1 %v2374_v31 }
 0x17a   :  { %2377 = vmatpush1.bf16.msra.mxu1 %v2376_v35 }
 0x17b   :  { %2642 = vmatprep.subr.bf16.mxu1 %v2634_v39 }
 0x17d   :  { %754 = vmatmul.mubr.f32.vlgmr.msra.gmra.mrb[0].mxu1 %v452_v36 }
 0x17e   :  { %2644 = vmatpush3.bf16.msra.mxu1 %v2634_v39 }
 0x17f   :  { %2643 = vmatprep.subr.bf16.mxu1 %v2638_v42 }
 0x182   :  { %2645 = vmatpush3.bf16.msra.mxu1 %v2638_v42 }
 0x216   :  { %v1408_v41 = vpop.f32.mrb[2].mxu0 }
 0x217   :  { %1431 = vxpose.xlu0.b32.start [1/4] (short) %v1408_v41, 128  ;;  %v1410_v43 = vpop.f32.mrb[3].mxu0 }
 0x218   :  { %1463 = vxpose.xlu1.b32.start [1/4] (short) %v1410_v43, 128 }
 0x21a   :  { %v1414_v44 = vpop.f32.mrb[4].mxu0 }
 0x21b   :  { %1432 = vxpose.xlu0.b32.cont [2/4] (short) %v1414_v44, 128  ;;  %v1416_v45 = vpop.f32.mrb[5].mxu0 }
 0x21c   :  { %1464 = vxpose.xlu1.b32.cont [2/4] (short) %v1416_v45, 128 }
 0x21e   :  { %v1420_v46 = vpop.f32.mrb[6].mxu0 }
 0x21f   :  { %1433 = vxpose.xlu0.b32.cont [3/4] (short) %v1420_v46, 128  ;;  %v1422_v47 = vpop.f32.mrb[7].mxu0 }
 0x220   :  { %1465 = vxpose.xlu1.b32.cont [3/4] (short) %v1422_v47, 128 }
 0x222   :  { %v1426_v48 = vpop.f32.mrb[8].mxu0 }
 0x223   :  { %1434 = vxpose.xlu0.b32.end [4/4] (short) %v1426_v48, 128  ;;  %v1428_v49 = vpop.f32.mrb[9].mxu0 }
 0x224   :  { %1466 = vxpose.xlu1.b32.end [4/4] (short) %v1428_v49, 128 }
 0x250   :  { %v755_v57 = vpop.f32.mrb[0].mxu1 }
 0x251   :  { %v2646_v58 = vadd.f32 %v755_v57, %v469_v53  ;;  %v757_v59 = vpop.f32.mrb[1].mxu1 }
 0x252   :  { %v2647_v61 = vadd.f32 %v757_v59, %v473_v54 }
 0x254   :  { %v762_v63 = vcombine.low %v2646_v58, %v2647_v61 }
 0x256   :  { %v769_v0 = vrot.slane %v762_v63, %v768_v62 }
 0x258   :  { %v776_v2 = vrot.slane %v769_v0, %v768_v62 }
 0x25a   :  { %782 = vst.msk [vmem:[#allocation9] sm:$0x3] %vm780_vm3, %v776_v2 }
 0x297   :  { %v1447_v3 = vpop.trf.xlu0 }
 0x298   :  { %2068 = vmatprep.mubr.msk.f32.mxu0 %vm90_vm1, %v1447_v3  ;;  %v1479_v14 = vpop.trf.xlu1 }
 0x29b   :  { %v1448_v4 = vpop.trf.xlu0 }
 0x29c   :  { %2069 = vmatmul.mubr.msk.f32.vlgmr.msra.gmra.mrb[10].mxu0 %vm90_vm1, %v1448_v4  ;;  %v1480_v9 = vpop.trf.xlu1 }
 0x29f   :  { %v1449_v5 = vpop.trf.xlu0 }
 0x2a0   :  { %2071 = vmatprep.mubr.msk.f32.mxu0 %vm90_vm1, %v1449_v5  ;;  %v1481_v7 = vpop.trf.xlu1 }
 0x2a3   :  { %v1450_v6 = vpop.trf.xlu0 }
 0x2a4   :  { %2072 = vmatmul.mubr.msk.f32.gmra.mrb[12].mxu0 %vm90_vm1, %v1450_v6  ;;  %v1482_v56 = vpop.trf.xlu1 }
 0x2a7   :  { %v1451_v8 = vpop.trf.xlu0 }
 0x2a8   :  { %2074 = vmatprep.mubr.msk.f32.mxu0 %vm90_vm1, %v1451_v8  ;;  %v1483_v13 = vpop.trf.xlu1 }
 0x2ab   :  { %v1452_v10 = vpop.trf.xlu0 }
 0x2ac   :  { %2075 = vmatmul.mubr.msk.f32.gmra.mrb[14].mxu0 %vm90_vm1, %v1452_v10  ;;  %v1484_v16 = vpop.trf.xlu1 }
 0x2af   :  { %v1453_v12 = vpop.trf.xlu0 }
 0x2b0   :  { %2077 = vmatprep.mubr.msk.f32.mxu0 %vm90_vm1, %v1453_v12  ;;  %v1485_v19 = vpop.trf.xlu1 }
 0x2b3   :  { %v1454_v15 = vpop.trf.xlu0 }
 0x2b4   :  { %2078 = vmatmul.mubr.msk.f32.gmra.mrb[16].mxu0 %vm90_vm1, %v1454_v15  ;;  %v1486_v20 = vpop.trf.xlu1 }
 0x2b7   :  { %v1455_v17 = vpop.trf.xlu0 }
 0x2b8   :  { %2080 = vmatprep.mubr.msk.f32.mxu0 %vm90_vm1, %v1455_v17  ;;  %v1487_v23 = vpop.trf.xlu1 }
 0x2bb   :  { %v1456_v18 = vpop.trf.xlu0 }
 0x2bc   :  { %2081 = vmatmul.mubr.msk.f32.gmra.mrb[18].mxu0 %vm90_vm1, %v1456_v18  ;;  %v1488_v25 = vpop.trf.xlu1 }
 0x2bf   :  { %v1457_v11 = vpop.trf.xlu0 }
 0x2c0   :  { %2083 = vmatprep.mubr.msk.f32.mxu0 %vm90_vm1, %v1457_v11  ;;  %v1489_v28 = vpop.trf.xlu1 }
 0x2c3   :  { %v1458_v21 = vpop.trf.xlu0 }
 0x2c4   :  { %2084 = vmatmul.mubr.msk.f32.gmra.mrb[20].mxu0 %vm90_vm1, %v1458_v21  ;;  %v1490_v29 = vpop.trf.xlu1 }
 0x2c7   :  { %v1459_v22 = vpop.trf.xlu0 }
 0x2c8   :  { %2086 = vmatprep.mubr.msk.f32.mxu1 %vm90_vm1, %v1459_v22  ;;  %v1491_v30 = vpop.trf.xlu1 }
 0x2cb   :  { %v1460_v24 = vpop.trf.xlu0 }
 0x2cc   :  { %2087 = vmatmul.mubr.msk.f32.vlgmr.msra.gmra.mrb[2].mxu1 %vm90_vm1, %v1460_v24  ;;  %v1492_v31 = vpop.trf.xlu1 }
 0x2cf   :  { %v1461_v26 = vpop.trf.xlu0 }
 0x2d0   :  { %2089 = vmatprep.mubr.msk.f32.mxu1 %vm90_vm1, %v1461_v26  ;;  %v1493_v32 = vpop.trf.xlu1 }
 0x2d3   :  { %v1462_v27 = vpop.trf.xlu0 }
 0x2d4   :  { %2090 = vmatmul.mubr.msk.f32.gmra.mrb[4].mxu1 %vm90_vm1, %v1462_v27  ;;  %v1494_v33 = vpop.trf.xlu1 }
 0x2d5   :  { %2092 = vmatprep.mubr.msk.f32.mxu1 %vm90_vm1, %v1479_v14 }
 0x2d8   :  { %2093 = vmatmul.mubr.msk.f32.gmra.mrb[6].mxu1 %vm90_vm1, %v1480_v9 }
 0x2d9   :  { %2095 = vmatprep.mubr.msk.f32.mxu1 %vm90_vm1, %v1481_v7 }
 0x2dc   :  { %2096 = vmatmul.mubr.msk.f32.gmra.mrb[8].mxu1 %vm90_vm1, %v1482_v56 }
 0x2dd   :  { %2098 = vmatprep.mubr.msk.f32.mxu1 %vm90_vm1, %v1483_v13 }
 0x2e0   :  { %2099 = vmatmul.mubr.msk.f32.gmra.mrb[10].mxu1 %vm90_vm1, %v1484_v16 }
 0x2e1   :  { %2101 = vmatprep.mubr.msk.f32.mxu1 %vm90_vm1, %v1485_v19 }
 0x2e4   :  { %2102 = vmatmul.mubr.msk.f32.gmra.mrb[12].mxu1 %vm90_vm1, %v1486_v20 }
 0x2e5   :  { %2104 = vmatprep.mubr.msk.f32.mxu1 %vm90_vm1, %v1487_v23 }
 0x2e8   :  { %2105 = vmatmul.mubr.msk.f32.gmra.mrb[14].mxu1 %vm90_vm1, %v1488_v25 }
 0x2e9   :  { %2107 = vmatprep.mubr.msk.f32.mxu1 %vm90_vm1, %v1489_v28 }
 0x2ec   :  { %2108 = vmatmul.mubr.msk.f32.gmra.mrb[16].mxu1 %vm90_vm1, %v1490_v29 }
 0x2ed   :  { %2110 = vmatprep.mubr.msk.f32.mxu1 %vm90_vm1, %v1491_v30 }
 0x2f0   :  { %2111 = vmatmul.mubr.msk.f32.gmra.mrb[18].mxu1 %vm90_vm1, %v1492_v31 }
 0x2f1   :  { %2113 = vmatprep.mubr.msk.f32.mxu1 %vm90_vm1, %v1493_v32 }
 0x2f4   :  { %2114 = vmatmul.mubr.msk.f32.gmra.mrb[20].mxu1 %vm90_vm1, %v1494_v33 }
 0x36f   :  { %v2070_v34 = vpop.f32.mrb[10].mxu0 }
 0x370   :  { %v1657_v35 = vpop.f32.mrb[11].mxu0 }
 0x371   :  { %1816 = vxpose.xlu0.b32.start [1/16] (narrow) %v1657_v35, 16 }
 0x375   :  { %1817 = vxpose.xlu0.b32.cont [2/16] (narrow) %v2070_v34, 16 }
 0x377   :  { %v2073_v36 = vpop.f32.mrb[12].mxu0 }
 0x378   :  { %v1667_v37 = vpop.f32.mrb[13].mxu0 }
 0x379   :  { %1818 = vxpose.xlu0.b32.cont [3/16] (narrow) %v1667_v37, 16 }
 0x37d   :  { %1819 = vxpose.xlu0.b32.cont [4/16] (narrow) %v2073_v36, 16 }
 0x37f   :  { %v2076_v38 = vpop.f32.mrb[14].mxu0 }
 0x380   :  { %v1677_v39 = vpop.f32.mrb[15].mxu0 }
 0x381   :  { %1820 = vxpose.xlu0.b32.cont [5/16] (narrow) %v1677_v39, 16 }
 0x385   :  { %1821 = vxpose.xlu0.b32.cont [6/16] (narrow) %v2076_v38, 16 }
 0x387   :  { %v2079_v40 = vpop.f32.mrb[16].mxu0 }
 0x388   :  { %v1687_v60 = vpop.f32.mrb[17].mxu0 }
 0x389   :  { %1822 = vxpose.xlu0.b32.cont [7/16] (narrow) %v1687_v60, 16 }
 0x38d   :  { %1823 = vxpose.xlu0.b32.cont [8/16] (narrow) %v2079_v40, 16 }
 0x38f   :  { %v2082_v41 = vpop.f32.mrb[18].mxu0 }
 0x390   :  { %v1697_v42 = vpop.f32.mrb[19].mxu0 }
 0x391   :  { %1824 = vxpose.xlu0.b32.cont [9/16] (narrow) %v1697_v42, 16 }
 0x395   :  { %1825 = vxpose.xlu0.b32.cont [10/16] (narrow) %v2082_v41, 16 }
 0x397   :  { %v2085_v43 = vpop.f32.mrb[20].mxu0 }
 0x398   :  { %v1707_v44 = vpop.f32.mrb[21].mxu0 }
 0x399   :  { %1826 = vxpose.xlu0.b32.cont [11/16] (narrow) %v1707_v44, 16 }
 0x39d   :  { %1827 = vxpose.xlu0.b32.cont [12/16] (narrow) %v2085_v43, 16 }
 0x39f   :  { %v2088_v45 = vpop.f32.mrb[2].mxu1 }
 0x3a0   :  { %v1717_v46 = vpop.f32.mrb[3].mxu1 }
 0x3a1   :  { %1828 = vxpose.xlu0.b32.cont [13/16] (narrow) %v1717_v46, 16 }
 0x3a5   :  { %1829 = vxpose.xlu0.b32.cont [14/16] (narrow) %v2088_v45, 16 }
 0x3a7   :  { %v2091_v47 = vpop.f32.mrb[4].mxu1 }
 0x3a8   :  { %v1727_v48 = vpop.f32.mrb[5].mxu1 }
 0x3a9   :  { %1830 = vxpose.xlu0.b32.cont [15/16] (narrow) %v1727_v48, 16 }
 0x3ab   :  { %v2094_v49 = vpop.f32.mrb[6].mxu1 }
 0x3ac   :  { %v1737_v50 = vpop.f32.mrb[7].mxu1 }
 0x3ad   :  { %1848 = vxpose.xlu1.b32.start [1/16] (narrow) %v1737_v50, 16  ;;  %1831 = vxpose.xlu0.b32.end [16/16] (narrow) %v2091_v47, 16 }
 0x3af   :  { %v2097_v51 = vpop.f32.mrb[8].mxu1 }
 0x3b0   :  { %v1747_v52 = vpop.f32.mrb[9].mxu1 }
 0x3b1   :  { %1849 = vxpose.xlu1.b32.cont [2/16] (narrow) %v2094_v49, 16 }
 0x3b3   :  { %v2100_v53 = vpop.f32.mrb[10].mxu1 }
 0x3b4   :  { %v1757_v54 = vpop.f32.mrb[11].mxu1 }
 0x3b5   :  { %1850 = vxpose.xlu1.b32.cont [3/16] (narrow) %v1747_v52, 16 }
 0x3b7   :  { %v2103_v55 = vpop.f32.mrb[12].mxu1 }
 0x3b8   :  { %v1767_v57 = vpop.f32.mrb[13].mxu1 }
 0x3b9   :  { %2771 = shalt.err (!%p2768_p0)
}
 0x3ba   :  { %s2772_s7 = scalar_lea.hbm %s3128_s12, 32 }
 0x3bb   :  { %p2773_p1 = scmp.ne.s32.totalorder %s3128_s12, %s2772_s7  ;;  %p2776_p2 = scmp.lt.u32.totalorder %s2772_s7, %s3128_s12 }
 0x3bd   :  { %p2778_p3 = pnand %p2776_p2, %p2773_p1 }
 0x3bf   :  { %2781 = shalt.err (!%p2778_p3)
}
 0x3c0   :  { %1951 = dma.vmem_to_hbm [thread:$0]  %s1949_s29, 32, %s3128_s12, [#allocation10]   ;;  %1851 = vxpose.xlu1.b32.cont [4/16] (narrow) %v2097_v51, 16 }
 0x3c1   :  { %s2782_s4 = scalar_lea.vmem %s1939_s6, 16  ;;  %s2786_s8 = scalar_lea.vmem %s1939_s6, 32 }
 0x3c2   :  { %p2783_p4 = scmp.ne.s32.totalorder %s1939_s6, %s2782_s4  ;;  %p2787_p5 = scmp.lt.s32.totalorder %s1939_s6, %s1939_s6 }
 0x3c3   :  { %p2788_p6 = scmp.lt.s32.totalorder %s2786_s8, %s2782_s4 }
 0x3c5   :  { %p2789_p7 = por %p2788_p6, %p2787_p5 }
 0x3c7   :  { %p2790_p8 = pnand %p2789_p7, %p2783_p4 }
 0x3c9   :  { %2793 = shalt.err (!%p2790_p8)
}
 0x3ca   :  { %s2794_s22 = scalar_lea.hbm %s3127_s11, 16 }
 0x3cb   :  { %p2795_p9 = scmp.ne.s32.totalorder %s3127_s11, %s2794_s22  ;;  %p2798_p10 = scmp.lt.u32.totalorder %s2794_s22, %s3127_s11 }
 0x3cd   :  { %p2800_p11 = pnand %p2798_p10, %p2795_p9 }
 0x3cf   :  { %2803 = shalt.err (!%p2800_p11)
}
 0x3d0   :  { %1941 = dma.vmem_to_hbm [thread:$0]  %s1939_s6, 16, %s3127_s11, [#allocation4]   ;;  %v2106_v58 = vpop.f32.mrb[14].mxu1  ;;  %1852 = vxpose.xlu1.b32.cont [5/16] (narrow) %v1757_v54, 16  ;;  %v2847_v14 = vmov 1935823168  }
 0x3d1   :  { %v1777_v59 = vpop.f32.mrb[15].mxu1  ;;  %v1893_v4 = vunpack.c.l.s4 %v2847_v14  ;;  %v1920_v10 = vld [vmem:[%s3126_s10] sm:$0xff]  ;;  %v1921_v12 = vld [vmem:[%s3126_s10 + $0x8] sm:$0xff]  ;;  %v1923_v21 = vld [vmem:[%s3126_s10 + $0x18] sm:$0xff]  ;;  %s2848_s25 = smov [#allocation11]  }
 0x3d2   :  { %v2109_v61 = vpop.f32.mrb[16].mxu1  ;;  %s1958_s14 = sshll.u32 %s2848_s25, 4  ;;  %s1959_s14 = int_to_ptr.vmem [resolvable:$true] %s1958_s14 }
 0x3d3   :  { %v1787_v62 = vpop.f32.mrb[17].mxu1  ;;  %v1894_v9 = vunpack.c.0.s8 %v1893_v4  ;;  %s2804_s15 = scalar_lea.vmem %s1959_s14, 512  ;;  %p2809_p13 = scmp.lt.s32.totalorder %s1959_s14, %s1959_s14 }
 0x3d4   :  { %1853 = vxpose.xlu1.b32.cont [6/16] (narrow) %v2100_v53, 16  ;;  %v2112_v63 = vpop.f32.mrb[18].mxu1  ;;  %p2805_p12 = scmp.ne.s32.totalorder %s1959_s14, %s2804_s15  ;;  %p2810_p0 = scmp.lt.s32.totalorder %s2804_s15, %s2804_s15 }
 0x3d5   :  { %v1797_v0 = vpop.f32.mrb[19].mxu1  ;;  %v1897_v6 = vsub.s32 %v1894_v9, %v2978_v1  ;;  %v1922_v1 = vld [vmem:[%s3126_s10 + $0x10] sm:$0xff] }
 0x3d6   :  { %v2115_v2 = vpop.f32.mrb[20].mxu1  ;;  %p2811_p1 = por %p2810_p0, %p2809_p13 }
 0x3d7   :  { %v1807_v3 = vpop.f32.mrb[21].mxu1 }
 0x3d8   :  { %1854 = vxpose.xlu1.b32.cont [7/16] (narrow) %v1767_v57, 16  ;;  %p2812_p2 = pnand %p2811_p1, %p2805_p12 }
 0x3dc   :  { %1855 = vxpose.xlu1.b32.cont [8/16] (narrow) %v2103_v55, 16 }
 0x3e0   :  { %1856 = vxpose.xlu1.b32.cont [9/16] (narrow) %v1777_v59, 16 }
 0x3e4   :  { %1857 = vxpose.xlu1.b32.cont [10/16] (narrow) %v2106_v58, 16 }
 0x3e8   :  { %1858 = vxpose.xlu1.b32.cont [11/16] (narrow) %v1787_v62, 16 }
 0x3ec   :  { %1859 = vxpose.xlu1.b32.cont [12/16] (narrow) %v2109_v61, 16 }
 0x3f0   :  { %1860 = vxpose.xlu1.b32.cont [13/16] (narrow) %v1797_v0, 16 }
 0x3f1   :  { %v1832_v5 = vpop.trf.xlu0 }
 0x3f4   :  { %1861 = vxpose.xlu1.b32.cont [14/16] (narrow) %v2112_v63, 16 }
 0x3f5   :  { %v1833_v13 = vpop.trf.xlu0 }
 0x3f8   :  { %1862 = vxpose.xlu1.b32.cont [15/16] (narrow) %v1807_v3, 16 }
 0x3fc   :  { %1863 = vxpose.xlu1.b32.end [16/16] (narrow) %v2115_v2, 16 }
 0x440   :  { %v1864_v7 = vpop.trf.xlu1 }
 0x441   :  { %v1884_v8 = vcombine.low %v1832_v5, %v1864_v7  ;;  %v1885_v56 = vcombine.high %v1832_v5, %v1864_v7 }
 0x443   :  { %v1898_v15 = vrot.slane %v1884_v8, %v1897_v6  ;;  %v1905_v16 = vrot.slane %v1885_v56, %v1897_v6 }
 0x444   :  { %v1865_v17 = vpop.trf.xlu1 }
 0x445   :  { %v1924_v18 = vadd.f32 %v1920_v10, %v1898_v15  ;;  %v1925_v19 = vadd.f32 %v1921_v12, %v1905_v16  ;;  %v1886_v11 = vcombine.low %v1833_v13, %v1865_v17  ;;  %v1887_v20 = vcombine.high %v1833_v13, %v1865_v17 }
 0x447   :  { %1928 = vst [vmem:[#allocation11] sm:$0xff] %v1924_v18  ;;  %1929 = vst [vmem:[#allocation11 + $0x8] sm:$0xff] %v1925_v19  ;;  %v1912_v22 = vrot.slane %v1886_v11, %v1897_v6  ;;  %v1919_v23 = vrot.slane %v1887_v20, %v1897_v6 }
 0x449   :  { %v1926_v24 = vadd.f32 %v1922_v1, %v1912_v22  ;;  %v1927_v25 = vadd.f32 %v1923_v21, %v1919_v23 }
 0x44b   :  { %1930 = vst [vmem:[#allocation11 + $0x10] sm:$0xff] %v1926_v24  ;;  %1931 = vst [vmem:[#allocation11 + $0x18] sm:$0xff] %v1927_v25 }
 0x44c   :  { %2815 = shalt.err (!%p2812_p2)
}
 0x44d   :  { %s2816_s17 = scalar_lea.hbm %s3129_s13, 512 }
 0x44e   :  { %p2817_p3 = scmp.ne.s32.totalorder %s3129_s13, %s2816_s17  ;;  %p2820_p4 = scmp.lt.u32.totalorder %s2816_s17, %s3129_s13 }
 0x450   :  { %p2822_p5 = pnand %p2820_p4, %p2817_p3 }
 0x452   :  { %2825 = shalt.err (!%p2822_p5)
}
 0x453   :  { %1961 = dma.vmem_to_hbm [thread:$0]  %s1959_s14, 512, %s3129_s13, [#allocation10]  }
 0x454   :  { %2830 = dma.done.wait [#allocation4], 16  }
 0x455   :  { %2831 = vsyncadd [#allocation4], 4294967280 }
 0x456   :  { %2832 = dma.done.wait [#allocation10], 544  }
 0x457   :  { %2833 = vsyncadd [#allocation10], 4294966752 }
 0x458   :  { %1971 = vsyncpa [#allocation3], 1 }
 0x459   :  { %1972 = vsyncpa [#allocation6], 1 }
 0x45a   :  { %1973 = vsyncpa [#allocation4], 1 }
 0x45b   :  { %1974 = vsyncpa [#allocation10], 1 }

</bundles_post_ra>
